<compile_context>
chip_gen: v5e
topology: v5e:2x2
jax: 0.10.0
libtpu: 0.0.40
codegen_flags: <defaults>
</compile_context>

<pallas_src>
import math
from functools import partial

import jax
import jax.numpy as jnp
from jax import lax
from jax.experimental import pallas as pl
from jax.experimental.pallas import tpu as pltpu

LANE = 128
LEFT = 16      # interior W offset in the padded scratch (aligned for f32 & bf16 tiles)
HALO = 8       # width of the zeroed halo strips (aligned stores; only 1 col is read)


def _round_up(x, m):
    return (x + m - 1) // m * m


# ----------------------------- Pallas kernel --------------------------------

def _bottleneck_kernel(*refs, H, W, Ho, Wo, stride, has_sc):
    if has_sc:
        (x_ref, w1_ref, w2_ref, w3_ref, wsc_ref,
         b1_ref, b2_ref, b3_ref, bsc_ref, o_ref, *scratch) = refs
    else:
        (x_ref, w1_ref, w2_ref, w3_ref,
         b1_ref, b2_ref, b3_ref, o_ref, *scratch) = refs
        wsc_ref = bsc_ref = None
    pad1_ref = scratch[0]
    xsc_ref = scratch[1] if stride > 1 else None

    cin_p = x_ref.shape[-1]
    p_p = w1_ref.shape[-1]
    c3_p = w3_ref.shape[-1]
    sdt = pad1_ref.dtype                                 # bf16 (stride 1) / f32 (stride>1)

    x_b16 = x_ref[...]                                   # (H, W, cin_p) bf16

    # ---- conv1 (1x1) + bn1 + relu  (bf16 MXU operands, f32 accumulate) ----
    h1 = jnp.dot(x_b16.reshape(H * W, cin_p), w1_ref[...],
                 preferred_element_type=jnp.float32)
    h1 = jnp.maximum(h1 + b1_ref[...], 0.0)              # (H*W, p_p) f32

    # ---- zero only the halo border of the padded scratch (cheap and done
    # every step, so it is safe however the batch grid splits across cores);
    # the interior is fully overwritten just below. ----
    z_w = jnp.zeros((H + 2, HALO, p_p), sdt)
    pad1_ref[:, LEFT - HALO:LEFT, :] = z_w                       # left halo strip
    pad1_ref[:, LEFT + W:LEFT + W + HALO, :] = z_w               # right halo strip
    z_h = jnp.zeros((1, W, p_p), sdt)
    pad1_ref[0:1, LEFT:LEFT + W, :] = z_h                        # top halo row
    pad1_ref[H + 1:H + 2, LEFT:LEFT + W, :] = z_h                # bottom halo row

    # interior store at a tile-aligned W offset (dense vst).
    pad1_ref[1:H + 1, LEFT:LEFT + W, :] = h1.reshape(H, W, p_p).astype(sdt)

    if xsc_ref is not None:
        # TODO(synk): only needed because strided sub-lane loads must be 32-bit;
        # otherwise the strided shortcut window would read x_ref directly.
        xsc_ref[...] = x_b16.astype(jnp.float32)

    def hwin(ky):
        if stride > 1:
            return pl.ds(ky, Ho, stride=stride)
        return pl.ds(ky, Ho)

    def wwin(kx):
        start = LEFT - 1 + kx
        if stride > 1:
            return pl.ds(start, Wo, stride=stride)
        return pl.ds(start, Wo)

    # ---- conv2 (3x3, stride, pad=1) + bn2 + relu ----
    # Taps are grouped along kx: one K = 3*p_p matmul per ky (3 total) so the
    # MXU contraction depth is >= 256; the first dot initializes acc.
    acc = None
    for ky in range(3):
        taps = [pad1_ref[hwin(ky), wwin(kx), :]
                .reshape(Ho * Wo, p_p).astype(jnp.bfloat16)
                for kx in range(3)]
        lhs = jnp.concatenate(taps, axis=-1)             # (Ho*Wo, 3*p_p) bf16
        part = jnp.dot(lhs, w2_ref[ky], preferred_element_type=jnp.float32)
        acc = part if acc is None else acc + part
    h2 = jnp.maximum(acc + b2_ref[...], 0.0)             # (Ho*Wo, p_p) f32

    # ---- conv3 (1x1) + bn3 ----
    y = jnp.dot(h2.astype(jnp.bfloat16), w3_ref[...],
                preferred_element_type=jnp.float32) + b3_ref[...]

    # ---- shortcut ----
    if stride > 1:
        xs = xsc_ref[pl.ds(0, Ho, stride=stride), pl.ds(0, Wo, stride=stride), :]
        xs = xs.reshape(Ho * Wo, cin_p)                  # f32
        xs_mm = xs.astype(jnp.bfloat16)
    else:
        xs = x_b16.reshape(Ho * Wo, cin_p)               # bf16, no round trip
        xs_mm = xs
    if has_sc:
        sc = jnp.dot(xs_mm, wsc_ref[...],
                     preferred_element_type=jnp.float32) + bsc_ref[...]
    else:
        sc = xs.astype(jnp.float32)                      # identity (cin_p == c3_p)

    out = jnp.maximum(y + sc, 0.0)                       # (Ho*Wo, c3_p) f32
    o_ref[...] = out.reshape(Ho, Wo, c3_p).astype(o_ref.dtype)


# ------------------------------ JAX wrapper ----------------------------------

def bottleneck_pallas(x_nchw, kp, stride, planes, expansion=4):
    x = jnp.transpose(x_nchw, (0, 2, 3, 1))              # NCHW -> NHWC
    N, H, W, cin = x.shape
    cin_p, p_p = kp['w1'].shape
    c3_p = kp['w3'].shape[1]
    c3 = expansion * planes
    Ho = (H + 2 - 3) // stride + 1
    Wo = (W + 2 - 3) // stride + 1
    has_sc = 'w_sc' in kp
    if not has_sc:
        # Identity shortcut only exists when stride == 1 and channels match.
        assert stride == 1 and cin == c3, (stride, cin, c3)

    x_p = jnp.pad(x, ((0, 0), (0, 0), (0, 0), (0, cin_p - cin))).astype(jnp.bfloat16)

    in_specs = [
        pl.BlockSpec((None, H, W, cin_p), lambda n: (n, 0, 0, 0)),
        pl.BlockSpec((cin_p, p_p), lambda n: (0, 0)),
        pl.BlockSpec((3, 3 * p_p, p_p), lambda n: (0, 0, 0)),
        pl.BlockSpec((p_p, c3_p), lambda n: (0, 0)),
    ]
    args = [x_p, kp['w1'], kp['w2'], kp['w3']]
    if has_sc:
        in_specs.append(pl.BlockSpec((cin_p, c3_p), lambda n: (0, 0)))
        args.append(kp['w_sc'])
    in_specs += [
        pl.BlockSpec((1, p_p), lambda n: (0, 0)),
        pl.BlockSpec((1, p_p), lambda n: (0, 0)),
        pl.BlockSpec((1, c3_p), lambda n: (0, 0)),
    ]
    args += [kp['b1'], kp['b2'], kp['b3']]
    if has_sc:
        in_specs.append(pl.BlockSpec((1, c3_p), lambda n: (0, 0)))
        args.append(kp['b_sc'])

    # bf16 scratch when tap reads are dense (stride 1); f32 where strided
    # sub-lane loads are needed (Mosaic strided loads are 32-bit only).
    scratch_dtype = jnp.bfloat16 if stride == 1 else jnp.float32
    scratch_shapes = [pltpu.VMEM((H + 2, LEFT + W + HALO, p_p), scratch_dtype)]
    if stride > 1:
        scratch_shapes.append(pltpu.VMEM((H, W, cin_p), jnp.float32))

    kernel = partial(_bottleneck_kernel, H=H, W=W, Ho=Ho, Wo=Wo,
                     stride=stride, has_sc=has_sc)

    y = pl.pallas_call(
        kernel,
        out_shape=jax.ShapeDtypeStruct((N, Ho, Wo, c3_p), jnp.bfloat16),
        grid_spec=pltpu.PrefetchScalarGridSpec(
            num_scalar_prefetch=0,
            grid=(N,),
            in_specs=in_specs,
            out_specs=pl.BlockSpec((None, Ho, Wo, c3_p), lambda n: (n, 0, 0, 0)),
            scratch_shapes=scratch_shapes),
        compiler_params=pltpu.CompilerParams(
            # TODO(synk): on v7x verify the batch axis really splits across both
            # TensorCores; fall back to CORE_PARALLEL / core_map if it does not.
            dimension_semantics=("parallel",),
            vmem_limit_bytes=48 * 1024 * 1024),
    )(*args)

    y = y[..., :c3]
    return jnp.transpose(y, (0, 3, 1, 2))                # NHWC -> NCHW (bf16)


# ------------------------- parameters / BN folding ---------------------------

def init_bottleneck_params(key, in_planes, planes, stride, expansion=4):
    c3 = expansion * planes
    ks = jax.random.split(key, 8)

    def conv_w(k, cout, cin, kh, kw):
        fan_in = cin * kh * kw
        return jax.random.normal(k, (cout, cin, kh, kw), jnp.float32) / math.sqrt(fan_in)

    def bn_p(k, c, tag, d):
        k1, k2, k3, k4 = jax.random.split(k, 4)
        d[f'{tag}_g'] = 1.0 + 0.1 * jax.random.normal(k1, (c,), jnp.float32)
        d[f'{tag}_b'] = 0.1 * jax.random.normal(k2, (c,), jnp.float32)
        d[f'{tag}_m'] = 0.1 * jax.random.normal(k3, (c,), jnp.float32)
        d[f'{tag}_v'] = jnp.abs(jax.random.normal(k4, (c,), jnp.float32)) + 0.5

    p = {}
    p['conv1_w'] = conv_w(ks[0], planes, in_planes, 1, 1)
    bn_p(ks[1], planes, 'bn1', p)
    p['conv2_w'] = conv_w(ks[2], planes, planes, 3, 3)
    bn_p(ks[3], planes, 'bn2', p)
    p['conv3_w'] = conv_w(ks[4], c3, planes, 1, 1)
    bn_p(ks[5], c3, 'bn3', p)
    if stride != 1 or in_planes != c3:
        p['sc_w'] = conv_w(ks[6], c3, in_planes, 1, 1)
        bn_p(ks[7], c3, 'bnsc', p)
    return p


def _fold_bn(g, b, m, v, eps):
    scale = g / jnp.sqrt(v + eps)
    return scale, b - m * scale


def prepare_kernel_params(p, in_planes, planes, expansion=4, eps=1e-5):
    """Fold eval-mode BN into conv weights, pad channels to LANE, cast bf16."""
    c3 = expansion * planes
    cin_p = _round_up(in_planes, LANE)
    p_p = _round_up(planes, LANE)
    c3_p = _round_up(c3, LANE)

    s1, b1 = _fold_bn(p['bn1_g'], p['bn1_b'], p['bn1_m'], p['bn1_v'], eps)
    s2, b2 = _fold_bn(p['bn2_g'], p['bn2_b'], p['bn2_m'], p['bn2_v'], eps)
    s3, b3 = _fold_bn(p['bn3_g'], p['bn3_b'], p['bn3_m'], p['bn3_v'], eps)

    def pad_mat(w, rows, cols):
        return jnp.pad(w, ((0, rows - w.shape[0]), (0, cols - w.shape[1])))

    def pad_vec(v, n):
        return jnp.pad(v, (0, n - v.shape[0])).reshape(1, n).astype(jnp.float32)

    w1 = p['conv1_w'][:, :, 0, 0].T * s1[None, :]                 # (cin, planes)
    w3 = p['conv3_w'][:, :, 0, 0].T * s3[None, :]                 # (planes, c3)

    # conv2 weights as (ky, kx*p_p + cin, cout): rows match the in-kernel
    # concat of the 3 kx taps -> one K = 3*p_p contraction per ky.
    w2 = jnp.transpose(p['conv2_w'], (2, 3, 1, 0))                # (ky, kx, cin, cout)
    w2 = w2 * s2[None, None, None, :]
    w2 = jnp.pad(w2, ((0, 0), (0, 0), (0, p_p - planes), (0, p_p - planes)))
    w2 = w2.reshape(3, 3 * p_p, p_p)

    kp = {
        'w1': pad_mat(w1, cin_p, p_p).astype(jnp.bfloat16),
        'w2': w2.astype(jnp.bfloat16),
        'w3': pad_mat(w3, p_p, c3_p).astype(jnp.bfloat16),
        'b1': pad_vec(b1, p_p),
        'b2': pad_vec(b2, p_p),
        'b3': pad_vec(b3, c3_p),
    }
    if 'sc_w' in p:
        ssc, bsc = _fold_bn(p['bnsc_g'], p['bnsc_b'], p['bnsc_m'], p['bnsc_v'], eps)
        wsc = p['sc_w'][:, :, 0, 0].T * ssc[None, :]              # (cin, c3)
        kp['w_sc'] = pad_mat(wsc, cin_p, c3_p).astype(jnp.bfloat16)
        kp['b_sc'] = pad_vec(bsc, c3_p)
    return kp


# --------------------------- pure-JAX reference ------------------------------

def bottleneck_ref(x_nchw, p, stride, expansion=4, eps=1e-5):
    x = jnp.transpose(x_nchw, (0, 2, 3, 1)).astype(jnp.float32)

    def conv(h, w_oihw, s, pad):
        w = jnp.transpose(w_oihw, (2, 3, 1, 0))                   # OIHW -> HWIO
        return lax.conv_general_dilated(
            h, w, (s, s), pad, dimension_numbers=('NHWC', 'HWIO', 'NHWC'))

    def bn(h, tag):
        g, b = p[f'{tag}_g'], p[f'{tag}_b']
        m, v = p[f'{tag}_m'], p[f'{tag}_v']
        return (h - m) * (g / jnp.sqrt(v + eps)) + b

    out = jnp.maximum(bn(conv(x, p['conv1_w'], 1, 'VALID'), 'bn1'), 0.0)
    out = jnp.maximum(bn(conv(out, p['conv2_w'], stride, [(1, 1), (1, 1)]), 'bn2'), 0.0)
    out = bn(conv(out, p['conv3_w'], 1, 'VALID'), 'bn3')
    sc = bn(conv(x, p['sc_w'], stride, 'VALID'), 'bnsc') if 'sc_w' in p else x
    out = jnp.maximum(out + sc, 0.0)
    return jnp.transpose(out, (0, 3, 1, 2))


# ----------------------------------- main -------------------------------------

if __name__ == "__main__":
    key = jax.random.PRNGKey(0)

    configs = [
        # (in_planes, planes, stride, N, H, W)
        (8, 4, 2, 2, 16, 16),    # projection shortcut (1x1 stride-2 conv + bn)
        (16, 4, 1, 2, 16, 16),   # identity shortcut
    ]
    for idx, (in_planes, planes, stride, N, H, W) in enumerate(configs):
        k_x, k_p = jax.random.split(jax.random.fold_in(key, idx))
        x = jax.random.normal(k_x, (N, in_planes, H, W), jnp.float32)   # NCHW
        raw = init_bottleneck_params(k_p, in_planes, planes, stride)
        kp = prepare_kernel_params(raw, in_planes, planes)

        out = bottleneck_pallas(x, kp, stride, planes)
        out = jax.block_until_ready(out)

        ref = bottleneck_ref(x, raw, stride)
        Ho = (H + 2 - 3) // stride + 1
        assert out.shape == ref.shape == (N, 4 * planes, Ho, Ho), (out.shape, ref.shape)

        # bf16 matmul operands + bf16 output vs f32 reference -> loosened tolerance.
        out_f = out.astype(jnp.float32)
        max_err = float(jnp.max(jnp.abs(out_f - ref)))
        mean_err = float(jnp.mean(jnp.abs(out_f - ref)))
        assert max_err < 2.5e-1 and mean_err < 2.5e-2, (idx, max_err, mean_err)

    print("KERNEL_OK")
</pallas_src>

<mosaic_0001>
module attributes {stable_mosaic.version = 11 : i64} {
  func.func @_bottleneck_kernel(%arg0: i32, %arg1: memref<1x16x16x128xbf16, #tpu.memory_space<vmem>>, %arg2: memref<128x128xbf16, #tpu.memory_space<vmem>>, %arg3: memref<3x384x128xbf16, #tpu.memory_space<vmem>>, %arg4: memref<128x128xbf16, #tpu.memory_space<vmem>>, %arg5: memref<128x128xbf16, #tpu.memory_space<vmem>>, %arg6: memref<1x128xf32, #tpu.memory_space<vmem>>, %arg7: memref<1x128xf32, #tpu.memory_space<vmem>>, %arg8: memref<1x128xf32, #tpu.memory_space<vmem>>, %arg9: memref<1x128xf32, #tpu.memory_space<vmem>>, %arg10: memref<1x8x8x128xbf16, #tpu.memory_space<vmem>>, %arg11: memref<18x40x128xf32, #tpu.memory_space<vmem>>, %arg12: memref<16x16x128xf32, #tpu.memory_space<vmem>>) attributes {dimension_semantics = [#tpu.dimension_semantics<parallel>], iteration_bounds = array<i64: 2>, scalar_prefetch = 0 : i64, scratch_operands = 2 : i64, tpu.core_type = #tpu.core_type<tc>, window_params = [{transform_indices = @transform_0, window_bounds = array<i64: 1, 16, 16, 128>}, {pipeline_mode = #tpu.pipeline_mode<synchronous>, transform_indices = @transform_1, window_bounds = array<i64: 128, 128>}, {pipeline_mode = #tpu.pipeline_mode<synchronous>, transform_indices = @transform_2, window_bounds = array<i64: 3, 384, 128>}, {pipeline_mode = #tpu.pipeline_mode<synchronous>, transform_indices = @transform_3, window_bounds = array<i64: 128, 128>}, {pipeline_mode = #tpu.pipeline_mode<synchronous>, transform_indices = @transform_4, window_bounds = array<i64: 128, 128>}, {pipeline_mode = #tpu.pipeline_mode<synchronous>, transform_indices = @transform_5, window_bounds = array<i64: 1, 128>}, {pipeline_mode = #tpu.pipeline_mode<synchronous>, transform_indices = @transform_6, window_bounds = array<i64: 1, 128>}, {pipeline_mode = #tpu.pipeline_mode<synchronous>, transform_indices = @transform_7, window_bounds = array<i64: 1, 128>}, {pipeline_mode = #tpu.pipeline_mode<synchronous>, transform_indices = @transform_8, window_bounds = array<i64: 1, 128>}, {transform_indices = @transform_9, window_bounds = array<i64: 1, 8, 8, 128>}]} {
    %c0 = arith.constant 0 : index
    %c0_0 = arith.constant 0 : index
    %c0_1 = arith.constant 0 : index
    %c0_2 = arith.constant 0 : index
    %0 = vector.load %arg1[%c0, %c0_0, %c0_1, %c0_2] : memref<1x16x16x128xbf16, #tpu.memory_space<vmem>>, vector<1x16x16x128xbf16>
    %1 = vector.shape_cast %0 : vector<1x16x16x128xbf16> to vector<16x16x128xbf16>
    %2 = vector.shape_cast %1 : vector<16x16x128xbf16> to vector<256x128xbf16>
    %c0_3 = arith.constant 0 : index
    %c0_4 = arith.constant 0 : index
    %3 = vector.load %arg2[%c0_3, %c0_4] : memref<128x128xbf16, #tpu.memory_space<vmem>>, vector<128x128xbf16>
    %cst = arith.constant dense<0.000000e+00> : vector<256x128xf32>
    %4 = tpu.matmul %2, %3, %cst {dimension_numbers = #tpu.dot_dimension_numbers<[1], [0], [0], [1], [0, 0, 1, 1], [], []>} : vector<256x128xbf16>, vector<128x128xbf16>, vector<256x128xf32> -> vector<256x128xf32>
    %c0_5 = arith.constant 0 : index
    %c0_6 = arith.constant 0 : index
    %5 = vector.load %arg6[%c0_5, %c0_6] : memref<1x128xf32, #tpu.memory_space<vmem>>, vector<1x128xf32>
    %6 = vector.broadcast %5 : vector<1x128xf32> to vector<256x128xf32>
    %7 = arith.addf %4, %6 : vector<256x128xf32>
    %cst_7 = arith.constant 0.000000e+00 : f32
    %8 = vector.broadcast %cst_7 : f32 to vector<256x128xf32>
    %9 = arith.maximumf %7, %8 : vector<256x128xf32>
    %cst_8 = arith.constant 0.000000e+00 : f32
    %10 = vector.broadcast %cst_8 : f32 to vector<18x8x128xf32>
    %c0_9 = arith.constant 0 : index
    %c8 = arith.constant 8 : index
    %c0_10 = arith.constant 0 : index
    %11 = vector.load %arg11[%c0_9, %c8, %c0_10] : memref<18x40x128xf32, #tpu.memory_space<vmem>>, vector<18x8x128xf32>
    tpu.vector_store %arg11[%c0_9, %c8, %c0_10], %10 {strides = array<i32>} : memref<18x40x128xf32, #tpu.memory_space<vmem>>, vector<18x8x128xf32>,
    %c0_11 = arith.constant 0 : index
    %c32 = arith.constant 32 : index
    %c0_12 = arith.constant 0 : index
    %12 = vector.load %arg11[%c0_11, %c32, %c0_12] : memref<18x40x128xf32, #tpu.memory_space<vmem>>, vector<18x8x128xf32>
    tpu.vector_store %arg11[%c0_11, %c32, %c0_12], %10 {strides = array<i32>} : memref<18x40x128xf32, #tpu.memory_space<vmem>>, vector<18x8x128xf32>,
    %cst_13 = arith.constant 0.000000e+00 : f32
    %13 = vector.broadcast %cst_13 : f32 to vector<1x16x128xf32>
    %c0_14 = arith.constant 0 : index
    %c16 = arith.constant 16 : index
    %c0_15 = arith.constant 0 : index
    %14 = vector.load %arg11[%c0_14, %c16, %c0_15] : memref<18x40x128xf32, #tpu.memory_space<vmem>>, vector<1x16x128xf32>
    tpu.vector_store %arg11[%c0_14, %c16, %c0_15], %13 {strides = array<i32>} : memref<18x40x128xf32, #tpu.memory_space<vmem>>, vector<1x16x128xf32>,
    %c17 = arith.constant 17 : index
    %c16_16 = arith.constant 16 : index
    %c0_17 = arith.constant 0 : index
    %15 = vector.load %arg11[%c17, %c16_16, %c0_17] : memref<18x40x128xf32, #tpu.memory_space<vmem>>, vector<1x16x128xf32>
    tpu.vector_store %arg11[%c17, %c16_16, %c0_17], %13 {strides = array<i32>} : memref<18x40x128xf32, #tpu.memory_space<vmem>>, vector<1x16x128xf32>,
    %16 = vector.shape_cast %9 : vector<256x128xf32> to vector<16x16x128xf32>
    %c1 = arith.constant 1 : index
    %c16_18 = arith.constant 16 : index
    %c0_19 = arith.constant 0 : index
    %17 = vector.load %arg11[%c1, %c16_18, %c0_19] : memref<18x40x128xf32, #tpu.memory_space<vmem>>, vector<16x16x128xf32>
    tpu.vector_store %arg11[%c1, %c16_18, %c0_19], %16 {strides = array<i32>} : memref<18x40x128xf32, #tpu.memory_space<vmem>>, vector<16x16x128xf32>,
    %18 = arith.extf %1 : vector<16x16x128xbf16> to vector<16x16x128xf32>
    %c0_20 = arith.constant 0 : index
    %c0_21 = arith.constant 0 : index
    %c0_22 = arith.constant 0 : index
    %19 = vector.load %arg12[%c0_20, %c0_21, %c0_22] : memref<16x16x128xf32, #tpu.memory_space<vmem>>, vector<16x16x128xf32>
    tpu.vector_store %arg12[%c0_20, %c0_21, %c0_22], %18 {strides = array<i32>} : memref<16x16x128xf32, #tpu.memory_space<vmem>>, vector<16x16x128xf32>,
    %c0_23 = arith.constant 0 : index
    %c15 = arith.constant 15 : index
    %c0_24 = arith.constant 0 : index
    %20 = tpu.strided_load %arg11[%c0_23, %c15, %c0_24] {strides = array<i32: 2, 2, 1>} : memref<18x40x128xf32, #tpu.memory_space<vmem>>, vector<8x8x128xf32>
    %21 = vector.shape_cast %20 : vector<8x8x128xf32> to vector<64x128xf32>
    %22 = arith.truncf %21 : vector<64x128xf32> to vector<64x128xbf16>
    %c0_25 = arith.constant 0 : index
    %c16_26 = arith.constant 16 : index
    %c0_27 = arith.constant 0 : index
    %23 = tpu.strided_load %arg11[%c0_25, %c16_26, %c0_27] {strides = array<i32: 2, 2, 1>} : memref<18x40x128xf32, #tpu.memory_space<vmem>>, vector<8x8x128xf32>
    %24 = vector.shape_cast %23 : vector<8x8x128xf32> to vector<64x128xf32>
    %25 = arith.truncf %24 : vector<64x128xf32> to vector<64x128xbf16>
    %c0_28 = arith.constant 0 : index
    %c17_29 = arith.constant 17 : index
    %c0_30 = arith.constant 0 : index
    %26 = tpu.strided_load %arg11[%c0_28, %c17_29, %c0_30] {strides = array<i32: 2, 2, 1>} : memref<18x40x128xf32, #tpu.memory_space<vmem>>, vector<8x8x128xf32>
    %27 = vector.shape_cast %26 : vector<8x8x128xf32> to vector<64x128xf32>
    %28 = arith.truncf %27 : vector<64x128xf32> to vector<64x128xbf16>
    %29 = tpu.concatenate %22, %25, %28 in 1 : vector<64x128xbf16>, vector<64x128xbf16>, vector<64x128xbf16> -> vector<64x384xbf16>
    %c0_31 = arith.constant 0 : index
    %c0_32 = arith.constant 0 : index
    %c0_33 = arith.constant 0 : index
    %30 = vector.load %arg3[%c0_31, %c0_32, %c0_33] : memref<3x384x128xbf16, #tpu.memory_space<vmem>>, vector<1x384x128xbf16>
    %31 = vector.shape_cast %30 : vector<1x384x128xbf16> to vector<384x128xbf16>
    %cst_34 = arith.constant dense<0.000000e+00> : vector<64x128xf32>
    %32 = tpu.matmul %29, %31, %cst_34 {dimension_numbers = #tpu.dot_dimension_numbers<[1], [0], [0], [1], [0, 0, 1, 1], [], []>} : vector<64x384xbf16>, vector<384x128xbf16>, vector<64x128xf32> -> vector<64x128xf32>
    %c1_35 = arith.constant 1 : index
    %c15_36 = arith.constant 15 : index
    %c0_37 = arith.constant 0 : index
    %33 = tpu.strided_load %arg11[%c1_35, %c15_36, %c0_37] {strides = array<i32: 2, 2, 1>} : memref<18x40x128xf32, #tpu.memory_space<vmem>>, vector<8x8x128xf32>
    %34 = vector.shape_cast %33 : vector<8x8x128xf32> to vector<64x128xf32>
    %35 = arith.truncf %34 : vector<64x128xf32> to vector<64x128xbf16>
    %c1_38 = arith.constant 1 : index
    %c16_39 = arith.constant 16 : index
    %c0_40 = arith.constant 0 : index
    %36 = tpu.strided_load %arg11[%c1_38, %c16_39, %c0_40] {strides = array<i32: 2, 2, 1>} : memref<18x40x128xf32, #tpu.memory_space<vmem>>, vector<8x8x128xf32>
    %37 = vector.shape_cast %36 : vector<8x8x128xf32> to vector<64x128xf32>
    %38 = arith.truncf %37 : vector<64x128xf32> to vector<64x128xbf16>
    %c1_41 = arith.constant 1 : index
    %c17_42 = arith.constant 17 : index
    %c0_43 = arith.constant 0 : index
    %39 = tpu.strided_load %arg11[%c1_41, %c17_42, %c0_43] {strides = array<i32: 2, 2, 1>} : memref<18x40x128xf32, #tpu.memory_space<vmem>>, vector<8x8x128xf32>
    %40 = vector.shape_cast %39 : vector<8x8x128xf32> to vector<64x128xf32>
    %41 = arith.truncf %40 : vector<64x128xf32> to vector<64x128xbf16>
    %42 = tpu.concatenate %35, %38, %41 in 1 : vector<64x128xbf16>, vector<64x128xbf16>, vector<64x128xbf16> -> vector<64x384xbf16>
    %c1_44 = arith.constant 1 : index
    %c0_45 = arith.constant 0 : index
    %c0_46 = arith.constant 0 : index
    %43 = vector.load %arg3[%c1_44, %c0_45, %c0_46] : memref<3x384x128xbf16, #tpu.memory_space<vmem>>, vector<1x384x128xbf16>
    %44 = vector.shape_cast %43 : vector<1x384x128xbf16> to vector<384x128xbf16>
    %cst_47 = arith.constant dense<0.000000e+00> : vector<64x128xf32>
    %45 = tpu.matmul %42, %44, %cst_47 {dimension_numbers = #tpu.dot_dimension_numbers<[1], [0], [0], [1], [0, 0, 1, 1], [], []>} : vector<64x384xbf16>, vector<384x128xbf16>, vector<64x128xf32> -> vector<64x128xf32>
    %46 = arith.addf %32, %45 : vector<64x128xf32>
    %c2 = arith.constant 2 : index
    %c15_48 = arith.constant 15 : index
    %c0_49 = arith.constant 0 : index
    %47 = tpu.strided_load %arg11[%c2, %c15_48, %c0_49] {strides = array<i32: 2, 2, 1>} : memref<18x40x128xf32, #tpu.memory_space<vmem>>, vector<8x8x128xf32>
    %48 = vector.shape_cast %47 : vector<8x8x128xf32> to vector<64x128xf32>
    %49 = arith.truncf %48 : vector<64x128xf32> to vector<64x128xbf16>
    %c2_50 = arith.constant 2 : index
    %c16_51 = arith.constant 16 : index
    %c0_52 = arith.constant 0 : index
    %50 = tpu.strided_load %arg11[%c2_50, %c16_51, %c0_52] {strides = array<i32: 2, 2, 1>} : memref<18x40x128xf32, #tpu.memory_space<vmem>>, vector<8x8x128xf32>
    %51 = vector.shape_cast %50 : vector<8x8x128xf32> to vector<64x128xf32>
    %52 = arith.truncf %51 : vector<64x128xf32> to vector<64x128xbf16>
    %c2_53 = arith.constant 2 : index
    %c17_54 = arith.constant 17 : index
    %c0_55 = arith.constant 0 : index
    %53 = tpu.strided_load %arg11[%c2_53, %c17_54, %c0_55] {strides = array<i32: 2, 2, 1>} : memref<18x40x128xf32, #tpu.memory_space<vmem>>, vector<8x8x128xf32>
    %54 = vector.shape_cast %53 : vector<8x8x128xf32> to vector<64x128xf32>
    %55 = arith.truncf %54 : vector<64x128xf32> to vector<64x128xbf16>
    %56 = tpu.concatenate %49, %52, %55 in 1 : vector<64x128xbf16>, vector<64x128xbf16>, vector<64x128xbf16> -> vector<64x384xbf16>
    %c2_56 = arith.constant 2 : index
    %c0_57 = arith.constant 0 : index
    %c0_58 = arith.constant 0 : index
    %57 = vector.load %arg3[%c2_56, %c0_57, %c0_58] : memref<3x384x128xbf16, #tpu.memory_space<vmem>>, vector<1x384x128xbf16>
    %58 = vector.shape_cast %57 : vector<1x384x128xbf16> to vector<384x128xbf16>
    %cst_59 = arith.constant dense<0.000000e+00> : vector<64x128xf32>
    %59 = tpu.matmul %56, %58, %cst_59 {dimension_numbers = #tpu.dot_dimension_numbers<[1], [0], [0], [1], [0, 0, 1, 1], [], []>} : vector<64x384xbf16>, vector<384x128xbf16>, vector<64x128xf32> -> vector<64x128xf32>
    %60 = arith.addf %46, %59 : vector<64x128xf32>
    %c0_60 = arith.constant 0 : index
    %c0_61 = arith.constant 0 : index
    %61 = vector.load %arg7[%c0_60, %c0_61] : memref<1x128xf32, #tpu.memory_space<vmem>>, vector<1x128xf32>
    %62 = vector.broadcast %61 : vector<1x128xf32> to vector<64x128xf32>
    %63 = arith.addf %60, %62 : vector<64x128xf32>
    %cst_62 = arith.constant 0.000000e+00 : f32
    %64 = vector.broadcast %cst_62 : f32 to vector<64x128xf32>
    %65 = arith.maximumf %63, %64 : vector<64x128xf32>
    %66 = arith.truncf %65 : vector<64x128xf32> to vector<64x128xbf16>
    %c0_63 = arith.constant 0 : index
    %c0_64 = arith.constant 0 : index
    %67 = vector.load %arg4[%c0_63, %c0_64] : memref<128x128xbf16, #tpu.memory_space<vmem>>, vector<128x128xbf16>
    %cst_65 = arith.constant dense<0.000000e+00> : vector<64x128xf32>
    %68 = tpu.matmul %66, %67, %cst_65 {dimension_numbers = #tpu.dot_dimension_numbers<[1], [0], [0], [1], [0, 0, 1, 1], [], []>} : vector<64x128xbf16>, vector<128x128xbf16>, vector<64x128xf32> -> vector<64x128xf32>
    %c0_66 = arith.constant 0 : index
    %c0_67 = arith.constant 0 : index
    %69 = vector.load %arg8[%c0_66, %c0_67] : memref<1x128xf32, #tpu.memory_space<vmem>>, vector<1x128xf32>
    %70 = vector.broadcast %69 : vector<1x128xf32> to vector<64x128xf32>
    %71 = arith.addf %68, %70 : vector<64x128xf32>
    %c0_68 = arith.constant 0 : index
    %c0_69 = arith.constant 0 : index
    %c0_70 = arith.constant 0 : index
    %72 = tpu.strided_load %arg12[%c0_68, %c0_69, %c0_70] {strides = array<i32: 2, 2, 1>} : memref<16x16x128xf32, #tpu.memory_space<vmem>>, vector<8x8x128xf32>
    %73 = vector.shape_cast %72 : vector<8x8x128xf32> to vector<64x128xf32>
    %74 = arith.truncf %73 : vector<64x128xf32> to vector<64x128xbf16>
    %c0_71 = arith.constant 0 : index
    %c0_72 = arith.constant 0 : index
    %75 = vector.load %arg5[%c0_71, %c0_72] : memref<128x128xbf16, #tpu.memory_space<vmem>>, vector<128x128xbf16>
    %cst_73 = arith.constant dense<0.000000e+00> : vector<64x128xf32>
    %76 = tpu.matmul %74, %75, %cst_73 {dimension_numbers = #tpu.dot_dimension_numbers<[1], [0], [0], [1], [0, 0, 1, 1], [], []>} : vector<64x128xbf16>, vector<128x128xbf16>, vector<64x128xf32> -> vector<64x128xf32>
    %c0_74 = arith.constant 0 : index
    %c0_75 = arith.constant 0 : index
    %77 = vector.load %arg9[%c0_74, %c0_75] : memref<1x128xf32, #tpu.memory_space<vmem>>, vector<1x128xf32>
    %78 = vector.broadcast %77 : vector<1x128xf32> to vector<64x128xf32>
    %79 = arith.addf %76, %78 : vector<64x128xf32>
    %80 = arith.addf %71, %79 : vector<64x128xf32>
    %cst_76 = arith.constant 0.000000e+00 : f32
    %81 = vector.broadcast %cst_76 : f32 to vector<64x128xf32>
    %82 = arith.maximumf %80, %81 : vector<64x128xf32>
    %83 = vector.shape_cast %82 : vector<64x128xf32> to vector<8x8x128xf32>
    %84 = arith.truncf %83 : vector<8x8x128xf32> to vector<8x8x128xbf16>
    %c0_77 = arith.constant 0 : index
    %c0_78 = arith.constant 0 : index
    %c0_79 = arith.constant 0 : index
    %c0_80 = arith.constant 0 : index
    %85 = vector.load %arg10[%c0_77, %c0_78, %c0_79, %c0_80] : memref<1x8x8x128xbf16, #tpu.memory_space<vmem>>, vector<1x8x8x128xbf16>
    %86 = vector.shape_cast %85 : vector<1x8x8x128xbf16> to vector<8x8x128xbf16>
    %87 = vector.shape_cast %84 : vector<8x8x128xbf16> to vector<1x8x8x128xbf16>
    tpu.vector_store %arg10[%c0_77, %c0_78, %c0_79, %c0_80], %87 {strides = array<i32>} : memref<1x8x8x128xbf16, #tpu.memory_space<vmem>>, vector<1x8x8x128xbf16>,
    return
  }
  func.func @transform_0(%arg0: i32) -> (i32, i32, i32, i32) {
    %c0_i32 = arith.constant 0 : i32
    %c0_i32_0 = arith.constant 0 : i32
    %c0_i32_1 = arith.constant 0 : i32
    %c0_i32_2 = arith.constant 0 : i32
    return %arg0, %c0_i32, %c0_i32_0, %c0_i32_1 : i32, i32, i32, i32
  }
  func.func @transform_1(%arg0: i32) -> (i32, i32) {
    %c0_i32 = arith.constant 0 : i32
    %c0_i32_0 = arith.constant 0 : i32
    %c0_i32_1 = arith.constant 0 : i32
    return %c0_i32, %c0_i32_0 : i32, i32
  }
  func.func @transform_2(%arg0: i32) -> (i32, i32, i32) {
    %c0_i32 = arith.constant 0 : i32
    %c0_i32_0 = arith.constant 0 : i32
    %c0_i32_1 = arith.constant 0 : i32
    %c0_i32_2 = arith.constant 0 : i32
    return %c0_i32, %c0_i32_0, %c0_i32_1 : i32, i32, i32
  }
  func.func @transform_3(%arg0: i32) -> (i32, i32) {
    %c0_i32 = arith.constant 0 : i32
    %c0_i32_0 = arith.constant 0 : i32
    %c0_i32_1 = arith.constant 0 : i32
    return %c0_i32, %c0_i32_0 : i32, i32
  }
  func.func @transform_4(%arg0: i32) -> (i32, i32) {
    %c0_i32 = arith.constant 0 : i32
    %c0_i32_0 = arith.constant 0 : i32
    %c0_i32_1 = arith.constant 0 : i32
    return %c0_i32, %c0_i32_0 : i32, i32
  }
  func.func @transform_5(%arg0: i32) -> (i32, i32) {
    %c0_i32 = arith.constant 0 : i32
    %c0_i32_0 = arith.constant 0 : i32
    %c0_i32_1 = arith.constant 0 : i32
    return %c0_i32, %c0_i32_0 : i32, i32
  }
  func.func @transform_6(%arg0: i32) -> (i32, i32) {
    %c0_i32 = arith.constant 0 : i32
    %c0_i32_0 = arith.constant 0 : i32
    %c0_i32_1 = arith.constant 0 : i32
    return %c0_i32, %c0_i32_0 : i32, i32
  }
  func.func @transform_7(%arg0: i32) -> (i32, i32) {
    %c0_i32 = arith.constant 0 : i32
    %c0_i32_0 = arith.constant 0 : i32
    %c0_i32_1 = arith.constant 0 : i32
    return %c0_i32, %c0_i32_0 : i32, i32
  }
  func.func @transform_8(%arg0: i32) -> (i32, i32) {
    %c0_i32 = arith.constant 0 : i32
    %c0_i32_0 = arith.constant 0 : i32
    %c0_i32_1 = arith.constant 0 : i32
    return %c0_i32, %c0_i32_0 : i32, i32
  }
  func.func @transform_9(%arg0: i32) -> (i32, i32, i32, i32) {
    %c0_i32 = arith.constant 0 : i32
    %c0_i32_0 = arith.constant 0 : i32
    %c0_i32_1 = arith.constant 0 : i32
    %c0_i32_2 = arith.constant 0 : i32
    return %arg0, %c0_i32, %c0_i32_0, %c0_i32_1 : i32, i32, i32, i32
  }
}

</mosaic_0001>

<bundles_post_ra>
// kernel: tpu_custom_call.1
= control target key start
LH: loop header
LB: loop body
LE: loop exit
PB: predicated region body
PF: predicated region fallthrough
CT: control target
= control target key end

     0   :  { %s3945_s0 = inlined_call_operand.hbm [shape: bf16[2,16,16,128], index: 0, kind: input, shape index: {}]   ;;  %s3946_s1 = inlined_call_operand.hbm [shape: bf16[128,128], index: 1, kind: input, shape index: {}]   ;;  %s3947_s2 = inlined_call_operand.hbm [shape: bf16[3,384,128], index: 2, kind: input, shape index: {}]   ;;  %s3948_s3 = inlined_call_operand.hbm [shape: bf16[128,128], index: 3, kind: input, shape index: {}]   ;;  %s3949_s4 = inlined_call_operand.hbm [shape: bf16[128,128], index: 4, kind: input, shape index: {}]   ;;  %s3950_s5 = inlined_call_operand.vmem [shape: f32[1,128], index: 5, kind: input, shape index: {}]   ;;  %s3951_s6 = inlined_call_operand.vmem [shape: f32[1,128], index: 6, kind: input, shape index: {}]   ;;  %s3952_s7 = inlined_call_operand.vmem [shape: f32[1,128], index: 7, kind: input, shape index: {}]   ;;  %s3953_s8 = inlined_call_operand.vmem [shape: f32[1,128], index: 8, kind: input, shape index: {}]   ;;  %s3954_s9 = inlined_call_operand.hbm [shape: bf16[2,8,8,128], index: 9, kind: output, shape index: {}]  }
   0x1   :  { %3957 = sst [smem:[#allocation18_spill]] %s3946_s1 }
   0x2   :  { %3958 = sst [smem:[#allocation19_spill]] %s3947_s2 }
   0x3   :  { %3959 = sst [smem:[#allocation20_spill]] %s3948_s3 }
   0x4   :  { %14 = vsyncpa [#allocation5], 0 }
   0x5   :  { %16 = vsyncpa [#allocation5 + $0x1], 0 }
   0x6   :  { %17 = vsyncpa [#allocation8], 0 }
   0x7   :  { %18 = vsyncpa [#allocation11], 0 }
   0x8   :  { %19 = vsyncpa [#allocation6], 0 }
   0x9   :  { %21 = vsyncpa [#allocation6 + $0x1], 0  ;;  %s3586_s30 = smov 0   ;;  %s3588_s10 = smov 0  }
   0xa   :  { %s3590_s11 = smov 0   ;;  %s3592_s12 = smov 0  }
   0xb LB: > { %s3607_s13 = sadd.s32 4294967295, %s3525_s12   ;;  %s2598_s14 = sadd.s32 4294967294, %s3525_s12   ;;  %s3525_s12 = sphi %s3592_s12, %s3975_s12   ;;  %s3521_s11 = sphi %s3590_s11, %s3974_s11   ;;  %s3517_s10 = sphi %s3588_s10, %s3973_s10   ;;  %s3513_s30 = sphi %s3586_s30, %s3972_s30  }
   0xc   : > { %p47_p0 = scmp.ne.s32.totalorder %s3517_s10, %s3513_s30  ;;  %p48_p1 = scmp.eq.s32.totalorder %s3607_s13, 0 }
   0xd   : > { %p239_p2 = scmp.eq.s32.totalorder %s3607_s13, 1  ;;  %p245_p3 = scmp.eq.s32.totalorder %s2598_s14, 1 }
   0xe   : > { %p3616_p4 = por %p48_p1, %p47_p0  ;;  %p2599_p5 = scmp.ge.s32.totalorder %s3525_s12, 1 }
   0xf   : > { %p3621_p6 = por %p245_p3, %p47_p0  ;;  %p252_p7 = scmp.lt.s32.totalorder %s3525_s12, 3 }
  0x10   : > { %s3962_s1 = sld [smem:[#allocation18_spill]]  ;;  %s3527_s21 = smov [#allocation7]  }
  0x11   : > { %p3629_p8 = pnand %p2599_p5, %p252_p7  ;;  %s265_s22 = sshll.u32 %s3527_s21, 4  ;;  %s266_s22 = int_to_ptr.vmem [resolvable:$true] %s265_s22 }
  0x12   : > { %s3965_s3 = sld [smem:[#allocation20_spill]]  ;;  %s3955_s27 = smov 64  }
  0x13   : > { %p3225_p9 = pneg %p3629_p8  ;;  %s3956_s28 = smov 4  }
  0x14   : > { %s3530_s29 = smov [#allocation10]   ;;  %s3966_s2 = sld [smem:[#allocation19_spill]] }
  0x15   : > { %p3637_p10 = pnand %p3225_p9, %p48_p1  ;;  %s293_s14 = sshll.u32 %s3530_s29, 4  ;;  %s294_s14 = int_to_ptr.vmem [resolvable:$true] %s293_s14 }
  0x16   : > { %s263_s19 = sshll.u32 %s3962_s1, 4  ;;  %s305_s24 = sshll.u32 %s3949_s4, 4  ;;  %s264_s19 = int_to_ptr.hbm [resolvable:$true] %s263_s19  ;;  %s306_s24 = int_to_ptr.hbm [resolvable:$true] %s305_s24 }
  0x17   : > { %3228 = dma.hbm_to_vmem [thread:$0]  (!%p3637_p10), %s264_s19, 1024, %s266_s22, [#allocation8], %s3955_s27, %s3955_s27, %s3956_s28  }
  0x18   : > { %s291_s26 = sshll.u32 %s3965_s3, 4  ;;  %s3531_s25 = smov [#allocation9]   ;;  %s292_s26 = int_to_ptr.hbm [resolvable:$true] %s291_s26 }
  0x19   : > { %3234 = dma.hbm_to_vmem [thread:$0]  (!%p3637_p10), %s292_s26, 1024, %s294_s14, [#allocation11], %s3955_s27, %s3955_s27, %s3956_s28  }
  0x1a   : > { %s277_s21 = sshll.u32 %s3966_s2, 4  ;;  %s279_s29 = sshll.u32 %s3531_s25, 4  ;;  %s278_s21 = int_to_ptr.hbm [resolvable:$true] %s277_s21  ;;  %s280_s29 = int_to_ptr.vmem [resolvable:$true] %s279_s29 }
  0x1b   : > { %3231 = dma.hbm_to_vmem [thread:$0]  (!%p3637_p10), %s278_s21, 9216, %s280_s29, [#allocation8], %s3955_s27, %s3955_s27, %s3956_s28  }
  0x1c   : > { %s3532_s17 = smov [#allocation12]   ;;  %s3672_s14 = sadd.s32 1, %s3525_s12  }
  0x1d   : > { %s307_s26 = sshll.u32 %s3532_s17, 4  ;;  %s34_s18 = sadd.s32 1, %s3521_s11  ;;  %s308_s26 = int_to_ptr.vmem [resolvable:$true] %s307_s26 }
  0x1e   : > { %3237 = dma.hbm_to_vmem [thread:$0]  (!%p3637_p10), %s306_s24, 1024, %s308_s26, [#allocation11], %s3955_s27, %s3955_s27, %s3956_s28  }
  0x1f   : > { %s31_s19 = ssub.s32 %s3525_s12, %s3672_s14  ;;  %p41_p12 = scmp.ne.s32.totalorder %s3521_s11, %s3517_s10 }
  0x20   : > { %p32_p13 = scmp.eq.s32.totalorder %s31_s19, 0  ;;  %p42_p0 = scmp.eq.s32.totalorder %s3525_s12, 0 }
  0x21   : > { %p3682_p3 = por %p239_p2, %p41_p12  ;;  %p3250_p5 = scmp.lt.s32.totalorder %s3525_s12, 2 }
  0x22   : > { %s3688_s22 = scalar_select %p32_p13, %s3521_s11, %s34_s18  }
  0x23   : > { %p43_p7 = por %p42_p0, %p41_p12  ;;  %s333_s23 = sand.u32 1, %s3521_s11  }
  0x24   : > { %s2605_s25 = sshll.u32 %s333_s23, 7  ;;  %s3068_s24 = sshll.u32 %s3525_s12, 7 }
  0x25   : > { %s342_s26 = scalar_lea.hbm %s3945_s0, %s3068_s24  ;;  %s337_s27 = scalar_lea.vmem [#allocation4], %s2605_s25 }
  0x26   : > { %s345_s28 = sshll.u32 %s337_s27, 4  ;;  %s343_s19 = sshll.u32 %s342_s26, 4  ;;  %s346_s28 = int_to_ptr.vmem [resolvable:$true] %s345_s28  ;;  %s344_s19 = int_to_ptr.hbm [resolvable:$true] %s343_s19 }
  0x27   : > { %p3695_p2 = pnand %p3250_p5, %p43_p7  ;;  %s334_s18 = scalar_lea.sflag [#allocation5], %s333_s23 }
  0x28   : > { %s3421_s2 = sshra.s32 %s344_s19, 4  ;;  %s3428_s27 = scalar_lea.hbm %s3945_s0, 256  ;;  %s3422_s2 = int_to_ptr.hbm [resolvable:$true] %s3421_s2 }
  0x29   : > { %s3423_s3 = scalar_lea.hbm %s3422_s2, 128  ;;  %p3425_p10 = pneg %p3695_p2 }
  0x2a   : > { %p3424_p9 = scmp.ne.s32.totalorder %s3422_s2, %s3423_s3  ;;  %p3429_p0 = scmp.lt.s32.totalorder %s3422_s2, %s3945_s0 }
  0x2b   : > { %p3430_p5 = scmp.lt.s32.totalorder %s3428_s27, %s3423_s3 }
  0x2c   : > { %p3426_p12 = pnand %p3425_p10, %p3424_p9 }
  0x2d   : > { %p3431_p7 = por %p3430_p5, %p3429_p0 }
  0x2e   : > { %p3427_p13 = pneg %p3426_p12 }
  0x30   : > { %p3432_p11 = pnand %p3431_p7, %p3427_p13 }
  0x32   : > { %3435 = shalt.err (!%p3432_p11)
}
  0x33   : > { %s3969_s23 = smov 4   ;;  %s3970_s26 = smov 64  }
  0x34   : > { %3241 = dma.hbm_to_vmem [thread:$0]  (!%p3695_p2), %s344_s19, 2048, %s346_s28, %s334_s18, %s3970_s26, %s3970_s26, %s3969_s23  }
  0x35   : > { %357 = sbr.rel (%p3629_p8) target bundleno = 897 (0x381), region = 56  ;;  %s3715_s24 = sand.u32 (!%p3629_p8), 1, %s3517_s10  }
  0x36   : > { %s2609_s2 = sshll.u32 (!%p3629_p8), %s3715_s24, 7  ;;  %s360_s3 = scalar_lea.sflag (!%p3629_p8), [#allocation5], %s3715_s24 }
  0x37   : > { %s3719_s25 = scalar_lea.vmem (!%p3629_p8), [#allocation4], %s2609_s2 }
  0x3a   : > { %3496 = dma.done.wait (%p3616_p4), %s360_s3, 2048  }
  0x3b   : > { %3498 = vsyncadd (%p3616_p4), %s360_s3, 4294965248 }
  0x3c   : > { %3500 = dma.done.wait (%p48_p1), [#allocation8], 10240  }
  0x3d   : > { %3502 = vsyncadd (%p48_p1), [#allocation8], 4294957056 }
  0x3e   : > { %3504 = dma.done.wait (%p48_p1), [#allocation11], 2048  }
  0x3f   : > { %3506 = vsyncadd (%p48_p1), [#allocation11], 4294965248  ;;  %v3092_v0 = vld [vmem:[#allocation7 + $0x38] sm:$0xff]  ;;  %v3091_v1 = vld [vmem:[#allocation7 + $0x30] sm:$0xff]  ;;  %v3533_v15 = vmov 0.0   ;;  %s2614_s17 = sshll.u32 %s3715_s24, 5 }
  0x40   : > { %615 = vmatpush.bf16.msra.mxu0 %v3092_v0  ;;  %v3090_v2 = vld [vmem:[#allocation7 + $0x28] sm:$0xff]  ;;  %v3089_v3 = vld [vmem:[#allocation7 + $0x20] sm:$0xff]  ;;  %v3088_v4 = vld [vmem:[#allocation7 + $0x18] sm:$0xff]  ;;  %737 = vst [vmem:[#allocation2 + $0x30] sm:$0xff] %v3533_v15  ;;  %s3905_s23 = scalar_lea.vmem [#allocation13], %s2614_s17  ;;  %s3181_s26 = sshll.u32 %s3607_s13, 5 }
  0x41   : > { %v3087_v5 = vld [vmem:[#allocation7 + $0x10] sm:$0xff]  ;;  %v3086_v6 = vld [vmem:[#allocation7 + $0x8] sm:$0xff]  ;;  %v3085_v7 = vld [vmem:[#allocation7] sm:$0xff]  ;;  %739 = vst [vmem:[#allocation2 + $0x80] sm:$0xff] %v3533_v15  ;;  %s2436_s1 = sshll.u32 %s3905_s23, 4  ;;  %s2424_s20 = scalar_lea.sflag [#allocation6], %s3715_s24  ;;  %s2437_s1 = int_to_ptr.vmem [resolvable:$true] %s2436_s1 }
  0x42   : > { %v3069_v8 = vld [vmem:[%s3719_s25] sm:$0xff]  ;;  %v3070_v9 = vld [vmem:[%s3719_s25 + $0x8] sm:$0xff]  ;;  %v3071_v10 = vld [vmem:[%s3719_s25 + $0x10] sm:$0xff]  ;;  %736 = vst [vmem:[#allocation2 + $0x8] sm:$0xff] %v3533_v15  ;;  %s3471_s27 = scalar_lea.hbm %s3954_s9, 64 }
  0x43   : > { %v3072_v11 = vld [vmem:[%s3719_s25 + $0x18] sm:$0xff]  ;;  %v3073_v12 = vld [vmem:[%s3719_s25 + $0x20] sm:$0xff]  ;;  %v3074_v13 = vld [vmem:[%s3719_s25 + $0x28] sm:$0xff]  ;;  %738 = vst [vmem:[#allocation2 + $0x58] sm:$0xff] %v3533_v15 }
  0x44   : > { %616 = vmatpush.bf16.msra.mxu0 %v3091_v1  ;;  %v3075_v14 = vld [vmem:[%s3719_s25 + $0x30] sm:$0xff]  ;;  %v3076_v16 = vld [vmem:[%s3719_s25 + $0x38] sm:$0xff]  ;;  %v3077_v24 = vld [vmem:[%s3719_s25 + $0x40] sm:$0xff]  ;;  %740 = vst [vmem:[#allocation2 + $0xa8] sm:$0xff] %v3533_v15 }
  0x45   : > { %v3124_v17 = vld [vmem:[#allocation9 + $0xf8] sm:$0xff]  ;;  %v3746_v20 = vld [vmem:[%s3950_s5] ss:$0 sm:$0xff]  ;;  %v3122_v27 = vld [vmem:[#allocation9 + $0xe8] sm:$0xff]  ;;  %741 = vst [vmem:[#allocation2 + $0xd0] sm:$0xff] %v3533_v15 }
  0x46   : > { %v3132_v18 = vld [vmem:[#allocation9 + $0x138] sm:$0xff]  ;;  %1403 = vmatpush.bf16.msra.mxu1 %v3124_v17  ;;  %v3123_v21 = vld [vmem:[#allocation9 + $0xf0] sm:$0xff]  ;;  %v3130_v28 = vld [vmem:[#allocation9 + $0x128] sm:$0xff]  ;;  %742 = vst [vmem:[#allocation2 + $0xf8] sm:$0xff] %v3533_v15 }
  0x47   : > { %v3140_v19 = vld [vmem:[#allocation9 + $0x178] sm:$0xff]  ;;  %1432 = vmatpush.bf16.msra.mxu2 %v3132_v18  ;;  %v3131_v22 = vld [vmem:[#allocation9 + $0x130] sm:$0xff]  ;;  %v3138_v29 = vld [vmem:[#allocation9 + $0x168] sm:$0xff]  ;;  %743 = vst [vmem:[#allocation2 + $0x120] sm:$0xff] %v3533_v15 }
  0x48   : > { %617 = vmatpush.bf16.msra.mxu0 %v3090_v2  ;;  %1461 = vmatpush.bf16.msra.mxu3 %v3140_v19  ;;  %v3139_v23 = vld [vmem:[#allocation9 + $0x170] sm:$0xff]  ;;  %v3121_v31 = vld [vmem:[#allocation9 + $0xe0] sm:$0xff]  ;;  %v3120_v36 = vld [vmem:[#allocation9 + $0xd8] sm:$0xff]  ;;  %744 = vst [vmem:[#allocation2 + $0x148] sm:$0xff] %v3533_v15 }
  0x49   : > { %v3129_v32 = vld [vmem:[#allocation9 + $0x120] sm:$0xff]  ;;  %v3128_v37 = vld [vmem:[#allocation9 + $0x118] sm:$0xff]  ;;  %745 = vst [vmem:[#allocation2 + $0x170] sm:$0xff] %v3533_v15  ;;  %v3119_v40 = vld [vmem:[#allocation9 + $0xd0] sm:$0xff] }
  0x4a   : > { %1404 = vmatpush.bf16.msra.mxu1 %v3123_v21  ;;  %v3137_v33 = vld [vmem:[#allocation9 + $0x160] sm:$0xff]  ;;  %v3136_v38 = vld [vmem:[#allocation9 + $0x158] sm:$0xff]  ;;  %v3127_v41 = vld [vmem:[#allocation9 + $0x110] sm:$0xff]  ;;  %746 = vst [vmem:[#allocation2 + $0x198] sm:$0xff] %v3533_v15 }
  0x4b   : > { %1433 = vmatpush.bf16.msra.mxu2 %v3131_v22  ;;  %v3135_v42 = vld [vmem:[#allocation9 + $0x150] sm:$0xff]  ;;  %v3078_v43 = vld [vmem:[%s3719_s25 + $0x48] sm:$0xff]  ;;  %747 = vst [vmem:[#allocation2 + $0x1c0] sm:$0xff] %v3533_v15  ;;  %v3117_v50 = vld [vmem:[#allocation9 + $0xc0] sm:$0xff] }
  0x4c   : > { %618 = vmatpush.bf16.msra.mxu0 %v3089_v3  ;;  %1462 = vmatpush.bf16.msra.mxu3 %v3139_v23  ;;  %748 = vst [vmem:[#allocation2 + $0x1e8] sm:$0xff] %v3533_v15  ;;  %v3118_v46 = vld [vmem:[#allocation9 + $0xc8] sm:$0xff]  ;;  %v3125_v51 = vld [vmem:[#allocation9 + $0x100] sm:$0xff]  ;;  %v3079_v56 = vld [vmem:[%s3719_s25 + $0x50] sm:$0xff] }
  0x4d   : > { %749 = vst [vmem:[#allocation2 + $0x210] sm:$0xff] %v3533_v15  ;;  %v3126_v47 = vld [vmem:[#allocation9 + $0x108] sm:$0xff]  ;;  %v3133_v52 = vld [vmem:[#allocation9 + $0x140] sm:$0xff]  ;;  %v3080_v63 = vld [vmem:[%s3719_s25 + $0x58] sm:$0xff] }
  0x4e   : > { %1405 = vmatpush.bf16.msra.mxu1 %v3122_v27  ;;  %v3134_v48 = vld [vmem:[#allocation9 + $0x148] sm:$0xff]  ;;  %750 = vst [vmem:[#allocation2 + $0x238] sm:$0xff] %v3533_v15 }
  0x4f   : > { %1434 = vmatpush.bf16.msra.mxu2 %v3130_v28  ;;  %751 = vst [vmem:[#allocation2 + $0x260] sm:$0xff] %v3533_v15  ;;  %v3081_v28 = vld [vmem:[%s3719_s25 + $0x60] sm:$0xff] }
  0x50   : > { %619 = vmatpush.bf16.msra.mxu0 %v3088_v4  ;;  %1463 = vmatpush.bf16.msra.mxu3 %v3138_v29  ;;  %752 = vst [vmem:[#allocation2 + $0x288] sm:$0xff] %v3533_v15 }
  0x51   : > { %772 = vst [vmem:[#allocation2 + $0x10] sm:$0xff] %v3533_v15 }
  0x52   : > { %1406 = vmatpush.bf16.msra.mxu1 %v3121_v31  ;;  %773 = vst [vmem:[#allocation2 + $0x18] sm:$0xff] %v3533_v15 }
  0x53   : > { %1435 = vmatpush.bf16.msra.mxu2 %v3129_v32 }
  0x54   : > { %620 = vmatpush.bf16.msra.mxu0 %v3087_v5  ;;  %1464 = vmatpush.bf16.msra.mxu3 %v3137_v33 }
  0x56   : > { %1407 = vmatpush.bf16.msra.mxu1 %v3120_v36 }
  0x57   : > { %1436 = vmatpush.bf16.msra.mxu2 %v3128_v37 }
  0x58   : > { %621 = vmatpush.bf16.msra.mxu0 %v3086_v6  ;;  %1465 = vmatpush.bf16.msra.mxu3 %v3136_v38 }
  0x5a   : > { %1408 = vmatpush.bf16.msra.mxu1 %v3119_v40 }
  0x5b   : > { %1437 = vmatpush.bf16.msra.mxu2 %v3127_v41 }
  0x5c   : > { %622 = vmatpush.bf16.msra.mxu0 %v3085_v7  ;;  %1466 = vmatpush.bf16.msra.mxu3 %v3135_v42  ;;  %v3083_v42 = vld [vmem:[%s3719_s25 + $0x70] sm:$0xff] }
  0x5e   : > { %1409 = vmatpush.bf16.msra.mxu1 %v3118_v46 }
  0x5f   : > { %623 = vmatmul.bf16.vlgmr.msra.gmra.mxu0 %v3069_v8  ;;  %1438 = vmatpush.bf16.msra.mxu2 %v3126_v47 }
  0x60   : > { %1467 = vmatpush.bf16.msra.mxu3 %v3134_v48 }
  0x62   : > { %1410 = vmatpush.bf16.msra.mxu1 %v3117_v50 }
  0x63   : > { %1439 = vmatpush.bf16.msra.mxu2 %v3125_v51 }
  0x64   : > { %1468 = vmatpush.bf16.msra.mxu3 %v3133_v52 }
  0x6f   : > { %628 = vmatmul.bf16.gmra.mxu0 %v3070_v9 }
  0x7f   : > { %633 = vmatmul.bf16.gmra.mxu0 %v3071_v10 }
  0x8f   : > { %638 = vmatmul.bf16.gmra.mxu0 %v3072_v11 }
  0x9f   : > { %643 = vmatmul.bf16.gmra.mxu0 %v3073_v12 }
  0xaf   : > { %648 = vmatmul.bf16.gmra.mxu0 %v3074_v13 }
  0xbf   : > { %653 = vmatmul.bf16.gmra.mxu0 %v3075_v14 }
  0xcf   : > { %658 = vmatmul.bf16.gmra.mxu0 %v3076_v16 }
  0xdc   : > { %v624_v25 = vpop.f32.mrf.mxu0 }
  0xdd   : > { %v625_v26 = vadd.f32 %v3746_v20, %v624_v25 }
  0xdf   : > { %v704_v30 = vmax.f32 %v625_v26, 0.0  ;;  %663 = vmatmul.bf16.gmra.mxu0 %v3077_v24 }
  0xe1   : > { %778 = vst [vmem:[#allocation2 + $0x38] sm:$0xff] %v704_v30 }
  0xe4   : > { %v626_v34 = vpop.f32.mrf.mxu0 }
  0xe5   : > { %v627_v35 = vadd.f32 %v3746_v20, %v626_v34 }
  0xe7   : > { %v705_v39 = vmax.f32 %v627_v35, 0.0  ;;  %v3082_v35 = vld [vmem:[%s3719_s25 + $0x68] sm:$0xff] }
  0xe9   : > { %779 = vst [vmem:[#allocation2 + $0x40] sm:$0xff] %v705_v39 }
  0xec   : > { %v629_v44 = vpop.f32.mrf.mxu0 }
  0xed   : > { %v630_v45 = vadd.f32 %v3746_v20, %v629_v44 }
  0xef   : > { %v706_v49 = vmax.f32 %v630_v45, 0.0  ;;  %668 = vmatmul.bf16.gmra.mxu0 %v3078_v43 }
  0xf0   : > { %v1067_v0 = vld [vmem:[#allocation2 + $0x37] ss:$2 sm:$0xff]  ;;  %v1091_v1 = vld [vmem:[#allocation2 + $0x38] ss:$2 sm:$0xff] }
  0xf1   : > { %780 = vst [vmem:[#allocation2 + $0x60] sm:$0xff] %v706_v49  ;;  %v1115_v3 = vld [vmem:[#allocation2 + $0x39] ss:$2 sm:$0xff]  ;;  %v1082_v5 = vpack.c.bf16 %v1067_v0, %v1067_v0  ;;  %v1106_v6 = vpack.c.bf16 %v1091_v1, %v1091_v1  ;;  %v3084_v49 = vld [vmem:[%s3719_s25 + $0x78] sm:$0xff] }
  0xf2   : > { %v1130_v8 = vpack.c.bf16 %v1115_v3, %v1115_v3 }
  0xf3   : > { %v1146_v15 = vunpack.c.l.b16 %v1082_v5  ;;  %v1170_v16 = vunpack.c.l.b16 %v1106_v6 }
  0xf4   : > { %v631_v53 = vpop.f32.mrf.mxu0  ;;  %v1194_v19 = vunpack.c.l.b16 %v1130_v8 }
  0xf5   : > { %v632_v54 = vadd.f32 %v3746_v20, %v631_v53 }
  0xf7   : > { %v707_v55 = vmax.f32 %v632_v54, 0.0 }
  0xf9   : > { %781 = vst [vmem:[#allocation2 + $0x68] sm:$0xff] %v707_v55 }
  0xfc   : > { %v634_v57 = vpop.f32.mrf.mxu0 }
  0xfd   : > { %v635_v58 = vadd.f32 %v3746_v20, %v634_v57 }
  0xff   : > { %v708_v59 = vmax.f32 %v635_v58, 0.0  ;;  %673 = vmatmul.bf16.gmra.mxu0 %v3079_v56 }
 0x101   : > { %782 = vst [vmem:[#allocation2 + $0x88] sm:$0xff] %v708_v59 }
 0x104   : > { %v636_v60 = vpop.f32.mrf.mxu0 }
 0x105   : > { %v637_v61 = vadd.f32 %v3746_v20, %v636_v60 }
 0x107   : > { %v709_v62 = vmax.f32 %v637_v61, 0.0 }
 0x109   : > { %783 = vst [vmem:[#allocation2 + $0x90] sm:$0xff] %v709_v62 }
 0x10c   : > { %v639_v2 = vpop.f32.mrf.mxu0 }
 0x10d   : > { %v640_v4 = vadd.f32 %v3746_v20, %v639_v2 }
 0x10f   : > { %v710_v7 = vmax.f32 %v640_v4, 0.0  ;;  %678 = vmatmul.bf16.gmra.mxu0 %v3080_v63 }
 0x110   : > { %v1069_v9 = vld [vmem:[#allocation2 + $0x87] ss:$2 sm:$0xff]  ;;  %v1093_v10 = vld [vmem:[#allocation2 + $0x88] ss:$2 sm:$0xff] }
 0x111   : > { %v1117_v11 = vld [vmem:[#allocation2 + $0x89] ss:$2 sm:$0xff]  ;;  %784 = vst [vmem:[#allocation2 + $0xb0] sm:$0xff] %v710_v7  ;;  %v1083_v12 = vpack.c.bf16 %v1069_v9, %v1069_v9  ;;  %v1107_v13 = vpack.c.bf16 %v1093_v10, %v1093_v10 }
 0x112   : > { %v1131_v14 = vpack.c.bf16 %v1117_v11, %v1117_v11 }
 0x113   : > { %v1147_v17 = vunpack.c.l.b16 %v1083_v12  ;;  %v1171_v18 = vunpack.c.l.b16 %v1107_v13 }
 0x114   : > { %v1195_v21 = vunpack.c.l.b16 %v1131_v14  ;;  %v641_v22 = vpop.f32.mrf.mxu0 }
 0x115   : > { %v642_v23 = vadd.f32 %v3746_v20, %v641_v22  ;;  %v1154_v24 = vpack.c.b16 %v1147_v17, %v1146_v15  ;;  %v1178_v25 = vpack.c.b16 %v1171_v18, %v1170_v16 }
 0x116   : > { %v1202_v26 = vpack.c.b16 %v1195_v21, %v1194_v19 }
 0x117   : > { %v711_v27 = vmax.f32 %v642_v23, 0.0  ;;  %1411 = vmatmul.bf16.vlgmr.msra.gmra.mxu1 %v1154_v24  ;;  %1440 = vmatmul.bf16.vlgmr.msra.gmra.mxu2 %v1178_v25 }
 0x118   : > { %1469 = vmatmul.bf16.vlgmr.msra.gmra.mxu3 %v1202_v26 }
 0x119   : > { %785 = vst [vmem:[#allocation2 + $0xb8] sm:$0xff] %v711_v27 }
 0x11c   : > { %v644_v29 = vpop.f32.mrf.mxu0 }
 0x11d   : > { %v645_v30 = vadd.f32 %v3746_v20, %v644_v29 }
 0x11f   : > { %v712_v31 = vmax.f32 %v645_v30, 0.0  ;;  %683 = vmatmul.bf16.gmra.mxu0 %v3081_v28 }
 0x121   : > { %786 = vst [vmem:[#allocation2 + $0xd8] sm:$0xff] %v712_v31 }
 0x124   : > { %v646_v32 = vpop.f32.mrf.mxu0 }
 0x125   : > { %v647_v33 = vadd.f32 %v3746_v20, %v646_v32  ;;  %v3108_v32 = vld [vmem:[#allocation9 + $0x78] sm:$0xff] }
 0x126   : > { %1663 = vmatpush.bf16.msrb.mxu2 %v3108_v32  ;;  %v3110_v32 = vld [vmem:[#allocation9 + $0x88] sm:$0xff] }
 0x127   : > { %v713_v34 = vmax.f32 %v647_v33, 0.0  ;;  %v3116_v33 = vld [vmem:[#allocation9 + $0xb8] sm:$0xff] }
 0x128   : > { %1692 = vmatpush.bf16.msrb.mxu3 %v3116_v33 }
 0x129   : > { %787 = vst [vmem:[#allocation2 + $0xe0] sm:$0xff] %v713_v34 }
 0x12c   : > { %v649_v36 = vpop.f32.mrf.mxu0 }
 0x12d   : > { %v650_v37 = vadd.f32 %v3746_v20, %v649_v36 }
 0x12f   : > { %v714_v38 = vmax.f32 %v650_v37, 0.0  ;;  %688 = vmatmul.bf16.gmra.mxu0 %v3082_v35 }
 0x130   : > { %v1071_v50 = vld [vmem:[#allocation2 + $0xd7] ss:$2 sm:$0xff]  ;;  %v1095_v51 = vld [vmem:[#allocation2 + $0xd8] ss:$2 sm:$0xff] }
 0x131   : > { %788 = vst [vmem:[#allocation2 + $0x100] sm:$0xff] %v714_v38  ;;  %v1119_v53 = vld [vmem:[#allocation2 + $0xd9] ss:$2 sm:$0xff]  ;;  %v1084_v55 = vpack.c.bf16 %v1071_v50, %v1071_v50  ;;  %v1108_v56 = vpack.c.bf16 %v1095_v51, %v1095_v51 }
 0x132   : > { %v1132_v58 = vpack.c.bf16 %v1119_v53, %v1119_v53  ;;  %v3107_v50 = vld [vmem:[#allocation9 + $0x70] sm:$0xff] }
 0x133   : > { %v1148_v1 = vunpack.c.l.b16 %v1084_v55  ;;  %v1172_v2 = vunpack.c.l.b16 %v1108_v56  ;;  %v3115_v51 = vld [vmem:[#allocation9 + $0xb0] sm:$0xff]  ;;  %1664 = vmatpush.bf16.msrb.mxu2 %v3107_v50 }
 0x134   : > { %v651_v39 = vpop.f32.mrf.mxu0  ;;  %v1196_v5 = vunpack.c.l.b16 %v1132_v58  ;;  %1693 = vmatpush.bf16.msrb.mxu3 %v3115_v51  ;;  %v3147_v50 = vld [vmem:[#allocation9 + $0x1b0] sm:$0xff] }
 0x135   : > { %v652_v40 = vadd.f32 %v3746_v20, %v651_v39 }
 0x137   : > { %v715_v41 = vmax.f32 %v652_v40, 0.0 }
 0x139   : > { %789 = vst [vmem:[#allocation2 + $0x108] sm:$0xff] %v715_v41 }
 0x13c   : > { %v654_v43 = vpop.f32.mrf.mxu0 }
 0x13d   : > { %v655_v44 = vadd.f32 %v3746_v20, %v654_v43 }
 0x13f   : > { %v716_v45 = vmax.f32 %v655_v44, 0.0  ;;  %693 = vmatmul.bf16.gmra.mxu0 %v3083_v42 }
 0x141   : > { %790 = vst [vmem:[#allocation2 + $0x128] sm:$0xff] %v716_v45 }
 0x144   : > { %v656_v46 = vpop.f32.mrf.mxu0 }
 0x145   : > { %v657_v47 = vadd.f32 %v3746_v20, %v656_v46 }
 0x147   : > { %v717_v48 = vmax.f32 %v657_v47, 0.0 }
 0x149   : > { %791 = vst [vmem:[#allocation2 + $0x130] sm:$0xff] %v717_v48 }
 0x14c   : > { %v659_v52 = vpop.f32.mrf.mxu0 }
 0x14d   : > { %v660_v54 = vadd.f32 %v3746_v20, %v659_v52 }
 0x14f   : > { %v718_v57 = vmax.f32 %v660_v54, 0.0  ;;  %698 = vmatmul.bf16.gmra.mxu0 %v3084_v49  ;;  %v3100_v49 = vld [vmem:[#allocation9 + $0x38] sm:$0xff] }
 0x150   : > { %v1073_v59 = vld [vmem:[#allocation2 + $0x127] ss:$2 sm:$0xff]  ;;  %v1097_v60 = vld [vmem:[#allocation2 + $0x128] ss:$2 sm:$0xff]  ;;  %1634 = vmatpush.bf16.msrb.mxu1 %v3100_v49 }
 0x151   : > { %v1121_v61 = vld [vmem:[#allocation2 + $0x129] ss:$2 sm:$0xff]  ;;  %792 = vst [vmem:[#allocation2 + $0x150] sm:$0xff] %v718_v57  ;;  %v1085_v62 = vpack.c.bf16 %v1073_v59, %v1073_v59  ;;  %v1109_v63 = vpack.c.bf16 %v1097_v60, %v1097_v60 }
 0x152   : > { %v1133_v0 = vpack.c.bf16 %v1121_v61, %v1121_v61 }
 0x153   : > { %v1149_v3 = vunpack.c.l.b16 %v1085_v62  ;;  %v1173_v4 = vunpack.c.l.b16 %v1109_v63 }
 0x154   : > { %v1197_v6 = vunpack.c.l.b16 %v1133_v0  ;;  %v661_v7 = vpop.f32.mrf.mxu0  ;;  %v3099_v0 = vld [vmem:[#allocation9 + $0x30] sm:$0xff] }
 0x155   : > { %v662_v8 = vadd.f32 %v3746_v20, %v661_v7  ;;  %v1155_v9 = vpack.c.b16 %v1149_v3, %v1148_v1  ;;  %v1179_v10 = vpack.c.b16 %v1173_v4, %v1172_v2  ;;  %v3106_v1 = vld [vmem:[#allocation9 + $0x68] sm:$0xff]  ;;  %1635 = vmatpush.bf16.msrb.mxu1 %v3099_v0 }
 0x156   : > { %v1203_v11 = vpack.c.b16 %v1197_v6, %v1196_v5  ;;  %v3114_v2 = vld [vmem:[#allocation9 + $0xa8] sm:$0xff]  ;;  %1665 = vmatpush.bf16.msrb.mxu2 %v3106_v1 }
 0x157   : > { %v719_v12 = vmax.f32 %v662_v8, 0.0  ;;  %1416 = vmatmul.bf16.gmra.mxu1 %v1155_v9  ;;  %1445 = vmatmul.bf16.gmra.mxu2 %v1179_v10 }
 0x158   : > { %1474 = vmatmul.bf16.gmra.mxu3 %v1203_v11  ;;  %v3098_v11 = vld [vmem:[#allocation9 + $0x28] sm:$0xff] }
 0x159   : > { %793 = vst [vmem:[#allocation2 + $0x158] sm:$0xff] %v719_v12  ;;  %1694 = vmatpush.bf16.msrb.mxu3 %v3114_v2  ;;  %v3105_v12 = vld [vmem:[#allocation9 + $0x60] sm:$0xff]  ;;  %1636 = vmatpush.bf16.msrb.mxu1 %v3098_v11 }
 0x15a   : > { %1666 = vmatpush.bf16.msrb.mxu2 %v3105_v12 }
 0x15c   : > { %v664_v13 = vpop.f32.mrf.mxu0 }
 0x15d   : > { %v665_v14 = vadd.f32 %v3746_v20, %v664_v13  ;;  %v3113_v13 = vld [vmem:[#allocation9 + $0xa0] sm:$0xff] }
 0x15e   : > { %1695 = vmatpush.bf16.msrb.mxu3 %v3113_v13 }
 0x15f   : > { %v720_v15 = vmax.f32 %v665_v14, 0.0 }
 0x161   : > { %794 = vst [vmem:[#allocation2 + $0x178] sm:$0xff] %v720_v15 }
 0x164   : > { %v666_v16 = vpop.f32.mrf.mxu0 }
 0x165   : > { %v667_v17 = vadd.f32 %v3746_v20, %v666_v16 }
 0x167   : > { %v721_v18 = vmax.f32 %v667_v17, 0.0  ;;  %v3097_v17 = vld [vmem:[#allocation9 + $0x20] sm:$0xff] }
 0x168   : > { %1637 = vmatpush.bf16.msrb.mxu1 %v3097_v17  ;;  %v3154_v17 = vld [vmem:[#allocation9 + $0x1e8] sm:$0xff] }
 0x169   : > { %795 = vst [vmem:[#allocation2 + $0x180] sm:$0xff] %v721_v18  ;;  %v3104_v18 = vld [vmem:[#allocation9 + $0x58] sm:$0xff] }
 0x16a   : > { %1667 = vmatpush.bf16.msrb.mxu2 %v3104_v18  ;;  %v3162_v18 = vld [vmem:[#allocation9 + $0x228] sm:$0xff] }
 0x16c   : > { %v669_v19 = vpop.f32.mrf.mxu0 }
 0x16d   : > { %v670_v21 = vadd.f32 %v3746_v20, %v669_v19  ;;  %v3112_v19 = vld [vmem:[#allocation9 + $0x98] sm:$0xff] }
 0x16e   : > { %1696 = vmatpush.bf16.msrb.mxu3 %v3112_v19  ;;  %v3146_v19 = vld [vmem:[#allocation9 + $0x1a8] sm:$0xff] }
 0x16f   : > { %v722_v22 = vmax.f32 %v670_v21, 0.0 }
 0x170   : > { %v1075_v34 = vld [vmem:[#allocation2 + $0x177] ss:$2 sm:$0xff]  ;;  %v1099_v35 = vld [vmem:[#allocation2 + $0x178] ss:$2 sm:$0xff] }
 0x171   : > { %796 = vst [vmem:[#allocation2 + $0x1a0] sm:$0xff] %v722_v22  ;;  %v1123_v37 = vld [vmem:[#allocation2 + $0x179] ss:$2 sm:$0xff]  ;;  %v1086_v39 = vpack.c.bf16 %v1075_v34, %v1075_v34  ;;  %v1110_v40 = vpack.c.bf16 %v1099_v35, %v1099_v35 }
 0x172   : > { %v1134_v42 = vpack.c.bf16 %v1123_v37, %v1123_v37  ;;  %v3094_v35 = vld [vmem:[#allocation9 + $0x8] sm:$0xff]  ;;  %v3109_v37 = vld [vmem:[#allocation9 + $0x80] sm:$0xff] }
 0x173   : > { %v1150_v52 = vunpack.c.l.b16 %v1086_v39  ;;  %v1174_v53 = vunpack.c.l.b16 %v1110_v40  ;;  %v3093_v39 = vld [vmem:[#allocation9] sm:$0xff] }
 0x174   : > { %v671_v23 = vpop.f32.mrf.mxu0  ;;  %v1198_v56 = vunpack.c.l.b16 %v1134_v42 }
 0x175   : > { %v672_v24 = vadd.f32 %v3746_v20, %v671_v23 }
 0x177   : > { %v723_v25 = vmax.f32 %v672_v24, 0.0  ;;  %v3096_v24 = vld [vmem:[#allocation9 + $0x18] sm:$0xff] }
 0x178   : > { %1638 = vmatpush.bf16.msrb.mxu1 %v3096_v24 }
 0x179   : > { %797 = vst [vmem:[#allocation2 + $0x1a8] sm:$0xff] %v723_v25  ;;  %v3103_v25 = vld [vmem:[#allocation9 + $0x50] sm:$0xff] }
 0x17a   : > { %1668 = vmatpush.bf16.msrb.mxu2 %v3103_v25  ;;  %v901_v25 = vld [vmem:[#allocation2 + $0x60] ss:$2 sm:$0xff] }
 0x17c   : > { %v674_v26 = vpop.f32.mrf.mxu0 }
 0x17d   : > { %v675_v27 = vadd.f32 %v3746_v20, %v674_v26  ;;  %v3111_v26 = vld [vmem:[#allocation9 + $0x90] sm:$0xff] }
 0x17e   : > { %1697 = vmatpush.bf16.msrb.mxu3 %v3111_v26  ;;  %v3161_v26 = vld [vmem:[#allocation9 + $0x220] sm:$0xff] }
 0x17f   : > { %v724_v28 = vmax.f32 %v675_v27, 0.0 }
 0x181   : > { %798 = vst [vmem:[#allocation2 + $0x1c8] sm:$0xff] %v724_v28 }
 0x182   : > { %1698 = vmatpush.bf16.msrb.mxu3 %v3110_v32 }
 0x184   : > { %v676_v29 = vpop.f32.mrf.mxu0 }
 0x185   : > { %v677_v30 = vadd.f32 %v3746_v20, %v676_v29 }
 0x186   : > { %1699 = vmatpush.bf16.msrb.mxu3 %v3109_v37 }
 0x187   : > { %v725_v31 = vmax.f32 %v677_v30, 0.0  ;;  %v3095_v30 = vld [vmem:[#allocation9 + $0x10] sm:$0xff] }
 0x188   : > { %1639 = vmatpush.bf16.msrb.mxu1 %v3095_v30  ;;  %v3145_v30 = vld [vmem:[#allocation9 + $0x1a0] sm:$0xff] }
 0x189   : > { %799 = vst [vmem:[#allocation2 + $0x1d0] sm:$0xff] %v725_v31  ;;  %v3102_v31 = vld [vmem:[#allocation9 + $0x48] sm:$0xff] }
 0x18a   : > { %1669 = vmatpush.bf16.msrb.mxu2 %v3102_v31 }
 0x18c   : > { %v679_v36 = vpop.f32.mrf.mxu0  ;;  %1640 = vmatpush.bf16.msrb.mxu1 %v3094_v35 }
 0x18d   : > { %v680_v38 = vadd.f32 %v3746_v20, %v679_v36  ;;  %v3101_v36 = vld [vmem:[#allocation9 + $0x40] sm:$0xff] }
 0x18e   : > { %1670 = vmatpush.bf16.msrb.mxu2 %v3101_v36  ;;  %v915_v36 = vpack.c.bf16 %v901_v25, %v901_v25 }
 0x18f   : > { %v726_v41 = vmax.f32 %v680_v38, 0.0 }
 0x190   : > { %v1077_v43 = vld [vmem:[#allocation2 + $0x1c7] ss:$2 sm:$0xff]  ;;  %v1101_v44 = vld [vmem:[#allocation2 + $0x1c8] ss:$2 sm:$0xff]  ;;  %1641 = vmatpush.bf16.msrb.mxu1 %v3093_v39 }
 0x191   : > { %v1125_v45 = vld [vmem:[#allocation2 + $0x1c9] ss:$2 sm:$0xff]  ;;  %800 = vst [vmem:[#allocation2 + $0x1f0] sm:$0xff] %v726_v41  ;;  %v1087_v46 = vpack.c.bf16 %v1077_v43, %v1077_v43  ;;  %v1111_v47 = vpack.c.bf16 %v1101_v44, %v1101_v44 }
 0x192   : > { %v1135_v48 = vpack.c.bf16 %v1125_v45, %v1125_v45  ;;  %v3156_v43 = vld [vmem:[#allocation9 + $0x1f8] sm:$0xff] }
 0x193   : > { %v1151_v54 = vunpack.c.l.b16 %v1087_v46  ;;  %v1175_v55 = vunpack.c.l.b16 %v1111_v47  ;;  %v3164_v44 = vld [vmem:[#allocation9 + $0x238] sm:$0xff]  ;;  %2088 = vmatpush.bf16.msra.mxu2 %v3156_v43  ;;  %v3155_v46 = vld [vmem:[#allocation9 + $0x1f0] sm:$0xff] }
 0x194   : > { %v1199_v57 = vunpack.c.l.b16 %v1135_v48  ;;  %v681_v58 = vpop.f32.mrf.mxu0  ;;  %v1412_v3 = vpop.f32.mrf.mxu1  ;;  %v3148_v45 = vld [vmem:[#allocation9 + $0x1b8] sm:$0xff]  ;;  %2117 = vmatpush.bf16.msra.mxu3 %v3164_v44  ;;  %v3163_v47 = vld [vmem:[#allocation9 + $0x230] sm:$0xff] }
 0x195   : > { %v682_v59 = vadd.f32 %v3746_v20, %v681_v58  ;;  %v1156_v60 = vpack.c.b16 %v1151_v54, %v1150_v52  ;;  %v1180_v61 = vpack.c.b16 %v1175_v55, %v1174_v53  ;;  %2059 = vmatpush.bf16.msra.mxu1 %v3148_v45 }
 0x196   : > { %v1204_v62 = vpack.c.b16 %v1199_v57, %v1198_v56 }
 0x197   : > { %v727_v63 = vmax.f32 %v682_v59, 0.0  ;;  %1421 = vmatmul.bf16.gmra.mxu1 %v1156_v60  ;;  %1450 = vmatmul.bf16.gmra.mxu2 %v1180_v61 }
 0x198   : > { %1479 = vmatmul.bf16.gmra.mxu3 %v1204_v62  ;;  %2089 = vmatpush.bf16.msra.mxu2 %v3155_v46 }
 0x199   : > { %801 = vst [vmem:[#allocation2 + $0x1f8] sm:$0xff] %v727_v63  ;;  %2118 = vmatpush.bf16.msra.mxu3 %v3163_v47  ;;  %2060 = vmatpush.bf16.msra.mxu1 %v3147_v50  ;;  %v3144_v50 = vld [vmem:[#allocation9 + $0x198] sm:$0xff] }
 0x19a   : > { %v1441_v4 = vpop.f32.mrf.mxu2 }
 0x19b   : > { %v1442_v5 = vadd.f32 %v1441_v4, %v1412_v3  ;;  %v1470_v6 = vpop.f32.mrf.mxu3 }
 0x19c   : > { %v684_v7 = vpop.f32.mrf.mxu0  ;;  %v3806_v0 = vpop.f32.mrf.mxu1  ;;  %2090 = vmatpush.bf16.msra.mxu2 %v3154_v17  ;;  %v885_v17 = vld [vmem:[#allocation2 + $0x19f] ss:$2 sm:$0xff] }
 0x19d   : > { %v3797_v8 = vadd.f32 %v1470_v6, %v1442_v5  ;;  %v685_v9 = vadd.f32 %v3746_v20, %v684_v7  ;;  %2119 = vmatpush.bf16.msra.mxu3 %v3162_v18  ;;  %2061 = vmatpush.bf16.msra.mxu1 %v3146_v19  ;;  %v909_v18 = vld [vmem:[#allocation2 + $0x1a0] ss:$2 sm:$0xff]  ;;  %v933_v19 = vld [vmem:[#allocation2 + $0x1a1] ss:$2 sm:$0xff] }
 0x19e   : > { %v919_v25 = vpack.c.bf16 %v909_v18, %v909_v18 }
 0x19f   : > { %v728_v10 = vmax.f32 %v685_v9, 0.0 }
 0x1a1   : > { %802 = vst [vmem:[#allocation2 + $0x218] sm:$0xff] %v728_v10  ;;  %2120 = vmatpush.bf16.msra.mxu3 %v3161_v26  ;;  %2062 = vmatpush.bf16.msra.mxu1 %v3145_v30  ;;  %v3149_v26 = vld [vmem:[#allocation9 + $0x1c0] sm:$0xff] }
 0x1a2   : > { %v3808_v1 = vpop.f32.mrf.mxu2 }
 0x1a3   : > { %v3810_v9 = vpop.f32.mrf.mxu3 }
 0x1a4   : > { %v686_v14 = vpop.f32.mrf.mxu0 }
 0x1a5   : > { %v687_v15 = vadd.f32 %v3746_v20, %v686_v14  ;;  %2063 = vmatpush.bf16.msra.mxu1 %v3144_v50  ;;  %v935_v50 = vld [vmem:[#allocation2 + $0x1f1] ss:$2 sm:$0xff] }
 0x1a7   : > { %v729_v16 = vmax.f32 %v687_v15, 0.0 }
 0x1a9   : > { %803 = vst [vmem:[#allocation2 + $0x220] sm:$0xff] %v729_v16  ;;  %v875_v16 = vld [vmem:[#allocation2 + $0xf] ss:$2 sm:$0xff] }
 0x1aa   : > { %v890_v32 = vpack.c.bf16 %v875_v16, %v875_v16  ;;  %v3158_v16 = vld [vmem:[#allocation9 + $0x208] sm:$0xff] }
 0x1ac   : > { %v689_v21 = vpop.f32.mrf.mxu0  ;;  %v954_v39 = vunpack.c.l.b16 %v890_v32 }
 0x1ad   : > { %v690_v22 = vadd.f32 %v3746_v20, %v689_v21  ;;  %v877_v21 = vld [vmem:[#allocation2 + $0x5f] ss:$2 sm:$0xff] }
 0x1af   : > { %v730_v23 = vmax.f32 %v690_v22, 0.0  ;;  %v899_v22 = vld [vmem:[#allocation2 + $0x10] ss:$2 sm:$0xff] }
 0x1b0   : > { %v1079_v48 = vld [vmem:[#allocation2 + $0x217] ss:$2 sm:$0xff]  ;;  %v1103_v49 = vld [vmem:[#allocation2 + $0x218] ss:$2 sm:$0xff]  ;;  %v914_v35 = vpack.c.bf16 %v899_v22, %v899_v22 }
 0x1b1   : > { %804 = vst [vmem:[#allocation2 + $0x240] sm:$0xff] %v730_v23  ;;  %v1127_v52 = vld [vmem:[#allocation2 + $0x219] ss:$2 sm:$0xff]  ;;  %v1088_v54 = vpack.c.bf16 %v1079_v48, %v1079_v48  ;;  %v1112_v55 = vpack.c.bf16 %v1103_v49, %v1103_v49  ;;  %v3152_v48 = vld [vmem:[#allocation9 + $0x1d8] sm:$0xff]  ;;  %v907_v22 = vld [vmem:[#allocation2 + $0x150] ss:$2 sm:$0xff] }
 0x1b2   : > { %v1136_v57 = vpack.c.bf16 %v1127_v52, %v1127_v52  ;;  %v3160_v49 = vld [vmem:[#allocation9 + $0x218] sm:$0xff]  ;;  %v918_v30 = vpack.c.bf16 %v907_v22, %v907_v22 }
 0x1b3   : > { %v1152_v2 = vunpack.c.l.b16 %v1088_v54  ;;  %v1176_v3 = vunpack.c.l.b16 %v1112_v55  ;;  %v905_v52 = vld [vmem:[#allocation2 + $0x100] ss:$2 sm:$0xff]  ;;  %2121 = vmatpush.bf16.msra.mxu3 %v3160_v49  ;;  %v929_v55 = vld [vmem:[#allocation2 + $0x101] ss:$2 sm:$0xff] }
 0x1b4   : > { %v691_v27 = vpop.f32.mrf.mxu0  ;;  %v1200_v6 = vunpack.c.l.b16 %v1136_v57  ;;  %v3159_v54 = vld [vmem:[#allocation9 + $0x210] sm:$0xff]  ;;  %v903_v57 = vld [vmem:[#allocation2 + $0xb0] ss:$2 sm:$0xff] }
 0x1b5   : > { %v692_v28 = vadd.f32 %v3746_v20, %v691_v27 }
 0x1b7   : > { %v731_v29 = vmax.f32 %v692_v28, 0.0  ;;  %v923_v28 = vld [vmem:[#allocation2 + $0x11] ss:$2 sm:$0xff]  ;;  %2122 = vmatpush.bf16.msra.mxu3 %v3159_v54  ;;  %v944_v54 = vpack.c.bf16 %v935_v50, %v935_v50 }
 0x1b8   : > { %v938_v37 = vpack.c.bf16 %v923_v28, %v923_v28  ;;  %v943_v28 = vpack.c.bf16 %v933_v19, %v933_v19  ;;  %v1771_v19 = vld [vmem:[#allocation2 + $0x61] ss:$2 sm:$0xff] }
 0x1b9   : > { %805 = vst [vmem:[#allocation2 + $0x248] sm:$0xff] %v731_v29  ;;  %v925_v29 = vld [vmem:[#allocation2 + $0x61] ss:$2 sm:$0xff] }
 0x1ba   : > { %v1002_v43 = vunpack.c.l.b16 %v938_v37  ;;  %v982_v37 = vunpack.c.l.b16 %v918_v30 }
 0x1bb   : > { %2123 = vmatpush.bf16.msra.mxu3 %v3158_v16 }
 0x1bc   : > { %v694_v33 = vpop.f32.mrf.mxu0 }
 0x1bd   : > { %v695_v34 = vadd.f32 %v3746_v20, %v694_v33 }
 0x1bf   : > { %v732_v38 = vmax.f32 %v695_v34, 0.0  ;;  %v891_v34 = vpack.c.bf16 %v877_v21, %v877_v21  ;;  %v883_v21 = vld [vmem:[#allocation2 + $0x14f] ss:$2 sm:$0xff] }
 0x1c1   : > { %806 = vst [vmem:[#allocation2 + $0x268] sm:$0xff] %v732_v38  ;;  %v939_v38 = vpack.c.bf16 %v925_v29, %v925_v29  ;;  %v894_v29 = vpack.c.bf16 %v883_v21, %v883_v21 }
 0x1c3   : > { %v1003_v44 = vunpack.c.l.b16 %v939_v38  ;;  %v3141_v38 = vld [vmem:[#allocation9 + $0x180] sm:$0xff] }
 0x1c4   : > { %v696_v40 = vpop.f32.mrf.mxu0 }
 0x1c5   : > { %v697_v41 = vadd.f32 %v3746_v20, %v696_v40  ;;  %v955_v40 = vunpack.c.l.b16 %v891_v34  ;;  %v1010_v47 = vpack.c.b16 %v1003_v44, %v1002_v43  ;;  %v983_v34 = vunpack.c.l.b16 %v919_v25  ;;  %v889_v43 = vld [vmem:[#allocation2 + $0x23f] ss:$2 sm:$0xff]  ;;  %v913_v44 = vld [vmem:[#allocation2 + $0x240] ss:$2 sm:$0xff] }
 0x1c6   : > { %v921_v49 = vpack.c.bf16 %v913_v44, %v913_v44 }
 0x1c7   : > { %v733_v42 = vmax.f32 %v697_v41, 0.0  ;;  %v978_v41 = vunpack.c.l.b16 %v914_v35  ;;  %v962_v45 = vpack.c.b16 %v955_v40, %v954_v39  ;;  %v1007_v35 = vunpack.c.l.b16 %v943_v28 }
 0x1c9   : > { %807 = vst [vmem:[#allocation2 + $0x270] sm:$0xff] %v733_v42  ;;  %v979_v42 = vunpack.c.l.b16 %v915_v36  ;;  %v958_v36 = vunpack.c.l.b16 %v894_v29 }
 0x1cb   : > { %v986_v46 = vpack.c.b16 %v979_v42, %v978_v41  ;;  %v988_v41 = vpack.c.b16 %v983_v34, %v982_v37  ;;  %v1729_v34 = vld [vmem:[#allocation2 + $0x14f] ss:$2 sm:$0xff]  ;;  %v1727_v37 = vld [vmem:[#allocation2 + $0xff] ss:$2 sm:$0xff] }
 0x1cc   : > { %v699_v51 = vpop.f32.mrf.mxu0 }
 0x1cd   : > { %v700_v53 = vadd.f32 %v3746_v20, %v699_v51  ;;  %v881_v51 = vld [vmem:[#allocation2 + $0xff] ss:$2 sm:$0xff] }
 0x1cf   : > { %v734_v56 = vmax.f32 %v700_v53, 0.0  ;;  %v3151_v53 = vld [vmem:[#allocation9 + $0x1d0] sm:$0xff] }
 0x1d0   : > { %v1081_v58 = vld [vmem:[#allocation2 + $0x267] ss:$2 sm:$0xff]  ;;  %v1105_v59 = vld [vmem:[#allocation2 + $0x268] ss:$2 sm:$0xff] }
 0x1d1   : > { %v1129_v60 = vld [vmem:[#allocation2 + $0x269] ss:$2 sm:$0xff]  ;;  %808 = vst [vmem:[#allocation2 + $0x290] sm:$0xff] %v734_v56  ;;  %v1089_v61 = vpack.c.bf16 %v1081_v58, %v1081_v58  ;;  %v1113_v62 = vpack.c.bf16 %v1105_v59, %v1105_v59  ;;  %v893_v58 = vpack.c.bf16 %v881_v51, %v881_v51  ;;  %v917_v59 = vpack.c.bf16 %v905_v52, %v905_v52 }
 0x1d2   : > { %v1137_v63 = vpack.c.bf16 %v1129_v60, %v1129_v60  ;;  %v879_v56 = vld [vmem:[#allocation2 + $0xaf] ss:$2 sm:$0xff] }
 0x1d3   : > { %v1153_v4 = vunpack.c.l.b16 %v1089_v61  ;;  %v1177_v5 = vunpack.c.l.b16 %v1113_v62  ;;  %v927_v60 = vld [vmem:[#allocation2 + $0xb1] ss:$2 sm:$0xff]  ;;  %v941_v61 = vpack.c.bf16 %v929_v55, %v929_v55  ;;  %v892_v62 = vpack.c.bf16 %v879_v56, %v879_v56 }
 0x1d4   : > { %v1201_v7 = vunpack.c.l.b16 %v1137_v63  ;;  %v701_v10 = vpop.f32.mrf.mxu0  ;;  %v1417_v23 = vpop.f32.mrf.mxu1  ;;  %v916_v63 = vpack.c.bf16 %v903_v57, %v903_v57  ;;  %v985_v56 = vunpack.c.l.b16 %v921_v49 }
 0x1d5   : > { %v702_v11 = vadd.f32 %v3746_v20, %v701_v10  ;;  %v1157_v12 = vpack.c.b16 %v1153_v4, %v1152_v2  ;;  %v1181_v13 = vpack.c.b16 %v1177_v5, %v1176_v3  ;;  %v3153_v20 = vld [vmem:[#allocation9 + $0x1e0] sm:$0xff]  ;;  %v940_v2 = vpack.c.bf16 %v927_v60, %v927_v60 }
 0x1d6   : > { %v1205_v14 = vpack.c.b16 %v1201_v7, %v1200_v6  ;;  %2091 = vmatpush.bf16.msra.mxu2 %v3153_v20  ;;  %v957_v3 = vunpack.c.l.b16 %v893_v58  ;;  %v981_v4 = vunpack.c.l.b16 %v917_v59  ;;  %v1005_v5 = vunpack.c.l.b16 %v941_v61  ;;  %v3142_v20 = vld [vmem:[#allocation9 + $0x188] sm:$0xff] }
 0x1d7   : > { %v735_v15 = vmax.f32 %v702_v11, 0.0  ;;  %1426 = vmatmul.bf16.gmra.mxu1 %v1157_v12  ;;  %1455 = vmatmul.bf16.gmra.mxu2 %v1181_v13  ;;  %v956_v6 = vunpack.c.l.b16 %v892_v62  ;;  %v980_v7 = vunpack.c.l.b16 %v916_v63  ;;  %v1004_v10 = vunpack.c.l.b16 %v940_v2  ;;  %v3143_v11 = vld [vmem:[#allocation9 + $0x190] sm:$0xff] }
 0x1d8   : > { %1484 = vmatmul.bf16.gmra.mxu3 %v1205_v14  ;;  %2064 = vmatpush.bf16.msra.mxu1 %v3143_v11  ;;  %v1008_v63 = vunpack.c.l.b16 %v944_v54 }
 0x1d9   : > { %809 = vst [vmem:[#allocation2 + $0x298] sm:$0xff] %v735_v15  ;;  %v963_v12 = vpack.c.b16 %v957_v3, %v956_v6  ;;  %v987_v13 = vpack.c.b16 %v981_v4, %v980_v7  ;;  %v1011_v14 = vpack.c.b16 %v1005_v5, %v1004_v10  ;;  %v3150_v15 = vld [vmem:[#allocation9 + $0x1c8] sm:$0xff] }
 0x1da   : > { %v1446_v24 = vpop.f32.mrf.mxu2  ;;  %2092 = vmatpush.bf16.msra.mxu2 %v3152_v48  ;;  %v897_v48 = vpack.c.bf16 %v889_v43, %v889_v43  ;;  %v1725_v7 = vld [vmem:[#allocation2 + $0xaf] ss:$2 sm:$0xff]  ;;  %v1749_v10 = vld [vmem:[#allocation2 + $0xb0] ss:$2 sm:$0xff]  ;;  %v1740_v43 = vpack.c.bf16 %v1727_v37, %v1727_v37 }
 0x1db   : > { %v1447_v27 = vadd.f32 %v1446_v24, %v1417_v23  ;;  %v1475_v31 = vpop.f32.mrf.mxu3  ;;  %v931_v23 = vld [vmem:[#allocation2 + $0x151] ss:$2 sm:$0xff]  ;;  %v895_v24 = vpack.c.bf16 %v885_v17, %v885_v17  ;;  %v1739_v17 = vpack.c.bf16 %v1725_v7, %v1725_v7  ;;  %v1763_v18 = vpack.c.bf16 %v1749_v10, %v1749_v10 }
 0x1dc   : > { %2065 = vmatpush.bf16.msra.mxu1 %v3142_v20  ;;  %v961_v55 = vunpack.c.l.b16 %v897_v48  ;;  %v3815_v57 = vpop.f32.mrf.mxu1  ;;  %v1804_v49 = vunpack.c.l.b16 %v1740_v43 }
 0x1dd   : > { %v3813_v33 = vadd.f32 %v1475_v31, %v1447_v27  ;;  %v3157_v27 = vld [vmem:[#allocation9 + $0x200] sm:$0xff]  ;;  %v942_v31 = vpack.c.bf16 %v931_v23, %v931_v23  ;;  %v959_v32 = vunpack.c.l.b16 %v895_v24  ;;  %v1786_v24 = vpack.c.bf16 %v1771_v19, %v1771_v19 }
 0x1de   : > { %2093 = vmatpush.bf16.msra.mxu2 %v3151_v53  ;;  %2124 = vmatpush.bf16.msra.mxu3 %v3157_v27  ;;  %v1803_v25 = vunpack.c.l.b16 %v1739_v17  ;;  %v1827_v20 = vunpack.c.l.b16 %v1763_v18 }
 0x1df   : > { %v1006_v39 = vunpack.c.l.b16 %v942_v31  ;;  %v964_v40 = vpack.c.b16 %v959_v32, %v958_v36  ;;  %v1850_v29 = vunpack.c.l.b16 %v1786_v24  ;;  %v1777_v36 = vld [vmem:[#allocation2 + $0x151] ss:$2 sm:$0xff] }
 0x1e0   : > { %2066 = vmatpush.bf16.msra.mxu1 %v3141_v38  ;;  %v1751_v38 = vld [vmem:[#allocation2 + $0x100] ss:$2 sm:$0xff] }
 0x1e1   : > { %v1012_v42 = vpack.c.b16 %v1007_v35, %v1006_v39  ;;  %v1753_v35 = vld [vmem:[#allocation2 + $0x150] ss:$2 sm:$0xff]  ;;  %v1741_v39 = vpack.c.bf16 %v1729_v34, %v1729_v34  ;;  %v1764_v44 = vpack.c.bf16 %v1751_v38, %v1751_v38 }
 0x1e2   : > { %2094 = vmatpush.bf16.msra.mxu2 %v3150_v15  ;;  %v3817_v58 = vpop.f32.mrf.mxu2  ;;  %v1747_v15 = vld [vmem:[#allocation2 + $0x60] ss:$2 sm:$0xff] }
 0x1e3   : > { %v3819_v62 = vpop.f32.mrf.mxu3  ;;  %v1762_v23 = vpack.c.bf16 %v1747_v15, %v1747_v15  ;;  %v1828_v50 = vunpack.c.l.b16 %v1764_v44 }
 0x1e5   : > { %v1826_v28 = vunpack.c.l.b16 %v1762_v23  ;;  %v1785_v23 = vld [vmem:[#allocation2 + $0x291] ss:$2 sm:$0xff] }
 0x1e6   : > { %2095 = vmatpush.bf16.msra.mxu2 %v3149_v26 }
 0x1e7   : > { %1642 = vmatmul.bf16.vlgmr.msrb.gmra.mxu1 %v962_v45  ;;  %1671 = vmatmul.bf16.vlgmr.msrb.gmra.mxu2 %v986_v46  ;;  %v937_v45 = vld [vmem:[#allocation2 + $0x241] ss:$2 sm:$0xff]  ;;  %v1834_v31 = vpack.c.b16 %v1827_v20, %v1826_v28  ;;  %v1759_v20 = vld [vmem:[#allocation2 + $0x240] ss:$2 sm:$0xff] }
 0x1e8   : > { %1700 = vmatmul.bf16.vlgmr.msrb.gmra.mxu3 %v1010_v47  ;;  %v887_v46 = vld [vmem:[#allocation2 + $0x1ef] ss:$2 sm:$0xff]  ;;  %v911_v47 = vld [vmem:[#allocation2 + $0x1f0] ss:$2 sm:$0xff]  ;;  %v945_v51 = vpack.c.bf16 %v937_v45, %v937_v45 }
 0x1e9   : > { %v896_v52 = vpack.c.bf16 %v887_v46, %v887_v46  ;;  %v920_v53 = vpack.c.bf16 %v911_v47, %v911_v47  ;;  %v1805_v46 = vunpack.c.l.b16 %v1741_v39  ;;  %v1783_v28 = vld [vmem:[#allocation2 + $0x241] ss:$2 sm:$0xff] }
 0x1ea   : > { %v1009_v59 = vunpack.c.l.b16 %v945_v51 }
 0x1eb   : > { %v960_v60 = vunpack.c.l.b16 %v896_v52  ;;  %v984_v61 = vunpack.c.l.b16 %v920_v53  ;;  %v1811_v52 = vpack.c.b16 %v1805_v46, %v1804_v49 }
 0x1ec   : > { %v1013_v4 = vpack.c.b16 %v1009_v59, %v1008_v63  ;;  %v1781_v59 = vld [vmem:[#allocation2 + $0x1f1] ss:$2 sm:$0xff] }
 0x1ed   : > { %v965_v2 = vpack.c.b16 %v961_v55, %v960_v60  ;;  %v989_v3 = vpack.c.b16 %v985_v56, %v984_v61  ;;  %v1733_v55 = vld [vmem:[#allocation2 + $0x1ef] ss:$2 sm:$0xff]  ;;  %v1757_v56 = vld [vmem:[#allocation2 + $0x1f0] ss:$2 sm:$0xff]  ;;  %v1731_v60 = vld [vmem:[#allocation2 + $0x19f] ss:$2 sm:$0xff] }
 0x1ee   : > { %v1755_v61 = vld [vmem:[#allocation2 + $0x1a0] ss:$2 sm:$0xff]  ;;  %v1743_v63 = vpack.c.bf16 %v1733_v55, %v1733_v55 }
 0x1f0   : > { %v1807_v10 = vunpack.c.l.b16 %v1743_v63 }
 0x1f7   : > { %1647 = vmatmul.bf16.gmra.mxu1 %v963_v12  ;;  %1676 = vmatmul.bf16.gmra.mxu2 %v987_v13  ;;  %v1773_v12 = vld [vmem:[#allocation2 + $0xb1] ss:$2 sm:$0xff] }
 0x1f8   : > { %1705 = vmatmul.bf16.gmra.mxu3 %v1011_v14  ;;  %v1723_v14 = vld [vmem:[#allocation2 + $0x5f] ss:$2 sm:$0xff]  ;;  %v1787_v21 = vpack.c.bf16 %v1773_v12, %v1773_v12 }
 0x1f9   : > { %v1738_v22 = vpack.c.bf16 %v1723_v14, %v1723_v14 }
 0x1fa   : > { %v1851_v26 = vunpack.c.l.b16 %v1787_v21  ;;  %v1737_v21 = vld [vmem:[#allocation2 + $0x28f] ss:$2 sm:$0xff] }
 0x1fb   : > { %v1802_v27 = vunpack.c.l.b16 %v1738_v22  ;;  %v1761_v22 = vld [vmem:[#allocation2 + $0x290] ss:$2 sm:$0xff] }
 0x1fc   : > { %v1858_v32 = vpack.c.b16 %v1851_v26, %v1850_v29  ;;  %v1745_v26 = vpack.c.bf16 %v1737_v21, %v1737_v21  ;;  %v1793_v29 = vpack.c.bf16 %v1785_v23, %v1785_v23  ;;  %v1449_v21 = vadd.f32 %v3817_v58, %v3815_v57  ;;  %v3167_v58 = vld [vmem:[#allocation10 + $0x10] sm:$0xff] }
 0x1fd   : > { %v1810_v30 = vpack.c.b16 %v1803_v25, %v1802_v27  ;;  %v1735_v25 = vld [vmem:[#allocation2 + $0x23f] ss:$2 sm:$0xff]  ;;  %v1769_v27 = vpack.c.bf16 %v1761_v22, %v1761_v22 }
 0x1fe   : > { %v1809_v34 = vunpack.c.l.b16 %v1745_v26  ;;  %v1857_v37 = vunpack.c.l.b16 %v1793_v29  ;;  %v3175_v26 = vld [vmem:[#allocation12 + $0x10] sm:$0xff] }
 0x207   : > { %1652 = vmatmul.bf16.gmra.mxu1 %v964_v40  ;;  %1681 = vmatmul.bf16.gmra.mxu2 %v988_v41  ;;  %v1765_v40 = vpack.c.bf16 %v1753_v35, %v1753_v35  ;;  %v1775_v41 = vld [vmem:[#allocation2 + $0x101] ss:$2 sm:$0xff]  ;;  %v1833_v35 = vunpack.c.l.b16 %v1769_v27  ;;  %v1478_v27 = vadd.f32 %v3819_v62, %v1449_v21 }
 0x208   : > { %1710 = vmatmul.bf16.gmra.mxu3 %v1012_v42  ;;  %v1789_v42 = vpack.c.bf16 %v1777_v36, %v1777_v36  ;;  %v1788_v45 = vpack.c.bf16 %v1775_v41, %v1775_v41 }
 0x209   : > { %v1829_v47 = vunpack.c.l.b16 %v1765_v40 }
 0x20a   : > { %v1853_v48 = vunpack.c.l.b16 %v1789_v42  ;;  %v1852_v51 = vunpack.c.l.b16 %v1788_v45  ;;  %v3180_v45 = vld [vmem:[#allocation12 + $0x38] sm:$0xff] }
 0x20b   : > { %v1835_v53 = vpack.c.b16 %v1829_v47, %v1828_v50  ;;  %2362 = vmatpush.bf16.msrb.mxu2 %v3180_v45 }
 0x20c   : > { %v1859_v54 = vpack.c.b16 %v1853_v48, %v1852_v51 }
 0x214   : > { %v1422_v5 = vpop.f32.mrf.mxu1 }
 0x217   : > { %1657 = vmatmul.bf16.gmra.mxu1 %v965_v2  ;;  %1686 = vmatmul.bf16.gmra.mxu2 %v989_v3  ;;  %v1767_v2 = vpack.c.bf16 %v1757_v56, %v1757_v56  ;;  %v1779_v3 = vld [vmem:[#allocation2 + $0x1a1] ss:$2 sm:$0xff] }
 0x218   : > { %1715 = vmatmul.bf16.gmra.mxu3 %v1013_v4  ;;  %v1791_v4 = vpack.c.bf16 %v1781_v59, %v1781_v59  ;;  %v1790_v7 = vpack.c.bf16 %v1779_v3, %v1779_v3 }
 0x21a   : > { %v1451_v6 = vpop.f32.mrf.mxu2  ;;  %v1855_v12 = vunpack.c.l.b16 %v1791_v4  ;;  %v1854_v15 = vunpack.c.l.b16 %v1790_v7  ;;  %v3170_v7 = vld [vmem:[#allocation10 + $0x28] sm:$0xff] }
 0x21b   : > { %v1452_v11 = vadd.f32 %v1451_v6, %v1422_v5  ;;  %v1480_v13 = vpop.f32.mrf.mxu3  ;;  %v1742_v5 = vpack.c.bf16 %v1731_v60, %v1731_v60  ;;  %v1766_v6 = vpack.c.bf16 %v1755_v61, %v1755_v61  ;;  %v3171_v60 = vld [vmem:[#allocation10 + $0x30] sm:$0xff]  ;;  %v3178_v61 = vld [vmem:[#allocation12 + $0x28] sm:$0xff] }
 0x21c   : > { %v1860_v19 = vpack.c.b16 %v1855_v12, %v1854_v15  ;;  %v3823_v24 = vpop.f32.mrf.mxu1 }
 0x21d   : > { %v3821_v16 = vadd.f32 %v1480_v13, %v1452_v11  ;;  %v1831_v11 = vunpack.c.l.b16 %v1767_v2  ;;  %v1806_v13 = vunpack.c.l.b16 %v1742_v5  ;;  %v1830_v14 = vunpack.c.l.b16 %v1766_v6 }
 0x21e   : > { %v1444_v2 = vadd.f32 %v3808_v1, %v3806_v0  ;;  %v3169_v1 = vld [vmem:[#allocation10 + $0x20] sm:$0xff] }
 0x21f   : > { %v1812_v17 = vpack.c.b16 %v1807_v10, %v1806_v13  ;;  %v1836_v18 = vpack.c.b16 %v1831_v11, %v1830_v14  ;;  %v3177_v10 = vld [vmem:[#allocation12 + $0x20] sm:$0xff] }
 0x220   : > { %v1473_v11 = vadd.f32 %v3810_v9, %v1444_v2 }
 0x222   : > { %v3825_v36 = vpop.f32.mrf.mxu2 }
 0x223   : > { %v3827_v38 = vpop.f32.mrf.mxu3 }
 0x227   : > { %2067 = vmatmul.bf16.vlgmr.msra.gmra.mxu1 %v1810_v30  ;;  %2096 = vmatmul.bf16.vlgmr.msra.gmra.mxu2 %v1834_v31  ;;  %v1744_v30 = vpack.c.bf16 %v1735_v25, %v1735_v25  ;;  %v1768_v31 = vpack.c.bf16 %v1759_v20, %v1759_v20  ;;  %v3168_v20 = vld [vmem:[#allocation10 + $0x18] sm:$0xff] }
 0x228   : > { %2125 = vmatmul.bf16.vlgmr.msra.gmra.mxu3 %v1858_v32  ;;  %v1792_v32 = vpack.c.bf16 %v1783_v28, %v1783_v28 }
 0x229   : > { %v1808_v39 = vunpack.c.l.b16 %v1744_v30  ;;  %v1832_v40 = vunpack.c.l.b16 %v1768_v31 }
 0x22a   : > { %v1856_v42 = vunpack.c.l.b16 %v1792_v32 }
 0x22b   : > { %v1813_v43 = vpack.c.b16 %v1809_v34, %v1808_v39  ;;  %v1837_v44 = vpack.c.b16 %v1833_v35, %v1832_v40  ;;  %v3174_v34 = vld [vmem:[#allocation12 + $0x8] sm:$0xff]  ;;  %v419_v35 = vld [vmem:[%s3719_s25] sm:$0xff]  }
 0x22c   : > { %v1861_v46 = vpack.c.b16 %v1857_v37, %v1856_v42  ;;  %v423_v37 = vld [vmem:[%s3719_s25 + $0x10] sm:$0xff]   ;;  %v810_v39 = vunpack.c.l.bf16 %v419_v35  ;;  %v811_v40 = vunpack.c.h.bf16 %v419_v35 }
 0x22d   : > { %v814_v62 = vunpack.c.l.bf16 %v423_v37 }
 0x22e   : > { %842 = vst [vmem:[#allocation3] sm:$0xff] %v810_v39  ;;  %v3879_v39 = vld [vmem:[%s3951_s6] ss:$0 sm:$0xff] }
 0x22f   : > { %843 = vst [vmem:[#allocation3 + $0x8] sm:$0xff] %v811_v40 }
 0x230   : > { %846 = vst [vmem:[#allocation3 + $0x20] sm:$0xff] %v814_v62 }
 0x237   : > { %2072 = vmatmul.bf16.gmra.mxu1 %v1811_v52  ;;  %2101 = vmatmul.bf16.gmra.mxu2 %v1835_v53  ;;  %v3172_v52 = vld [vmem:[#allocation10 + $0x38] sm:$0xff]  ;;  %v3179_v53 = vld [vmem:[#allocation12 + $0x30] sm:$0xff] }
 0x238   : > { %2130 = vmatmul.bf16.gmra.mxu3 %v1859_v54  ;;  %2246 = vmatpush.bf16.msrb.mxu1 %v3172_v52 }
 0x239   : > { %2363 = vmatpush.bf16.msrb.mxu2 %v3179_v53  ;;  %v2275_v53 = vld [vmem:[#allocation3] ss:$2 sm:$0xff] }
 0x23c   : > { %2247 = vmatpush.bf16.msrb.mxu1 %v3171_v60 }
 0x23d   : > { %2364 = vmatpush.bf16.msrb.mxu2 %v3178_v61 }
 0x240   : > { %2248 = vmatpush.bf16.msrb.mxu1 %v3170_v7 }
 0x241   : > { %2365 = vmatpush.bf16.msrb.mxu2 %v3177_v10 }
 0x244   : > { %2249 = vmatpush.bf16.msrb.mxu1 %v3169_v1 }
 0x247   : > { %2077 = vmatmul.bf16.gmra.mxu1 %v1812_v17  ;;  %2106 = vmatmul.bf16.gmra.mxu2 %v1836_v18  ;;  %v3176_v18 = vld [vmem:[#allocation12 + $0x18] sm:$0xff] }
 0x248   : > { %2135 = vmatmul.bf16.gmra.mxu3 %v1860_v19  ;;  %2366 = vmatpush.bf16.msrb.mxu2 %v3176_v18 }
 0x249   : > { %2250 = vmatpush.bf16.msrb.mxu1 %v3168_v20  ;;  %v435_v20 = vld [vmem:[%s3719_s25 + $0x40] sm:$0xff]  }
 0x24c   : > { %2367 = vmatpush.bf16.msrb.mxu2 %v3175_v26  ;;  %v439_v26 = vld [vmem:[%s3719_s25 + $0x50] sm:$0xff]  }
 0x24d   : > { %2251 = vmatpush.bf16.msrb.mxu1 %v3167_v58 }
 0x250   : > { %2368 = vmatpush.bf16.msrb.mxu2 %v3174_v34 }
 0x254   : > { %v1427_v41 = vpop.f32.mrf.mxu1 }
 0x257   : > { %2082 = vmatmul.bf16.gmra.mxu1 %v1813_v43  ;;  %2111 = vmatmul.bf16.gmra.mxu2 %v1837_v44  ;;  %v1454_v43 = vadd.f32 %v3825_v36, %v3823_v24  ;;  %v3166_v24 = vld [vmem:[#allocation10 + $0x8] sm:$0xff] }
 0x258   : > { %2140 = vmatmul.bf16.gmra.mxu3 %v1861_v46  ;;  %2252 = vmatpush.bf16.msrb.mxu1 %v3166_v24 }
 0x25a   : > { %v1456_v47 = vpop.f32.mrf.mxu2 }
 0x25b   : > { %v1457_v48 = vadd.f32 %v1456_v47, %v1427_v41  ;;  %v1485_v49 = vpop.f32.mrf.mxu3  ;;  %v815_v41 = vunpack.c.h.bf16 %v423_v37  ;;  %v1483_v47 = vadd.f32 %v3827_v38, %v1454_v43  ;;  %v427_v38 = vld [vmem:[%s3719_s25 + $0x20] sm:$0xff]  }
 0x25c   : > { %v3829_v50 = vpop.f32.mrf.mxu1 }
 0x25d   : > { %v3831_v51 = vadd.f32 %v1485_v49, %v1457_v48  ;;  %847 = vst [vmem:[#allocation3 + $0x28] sm:$0xff] %v815_v41  ;;  %v3173_v48 = vld [vmem:[#allocation12] sm:$0xff] }
 0x25e   : > { %2369 = vmatpush.bf16.msrb.mxu2 %v3173_v48  ;;  %v447_v48 = vld [vmem:[%s3719_s25 + $0x70] sm:$0xff]  }
 0x262   : > { %v3833_v54 = vpop.f32.mrf.mxu2 }
 0x263   : > { %v3835_v55 = vpop.f32.mrf.mxu3 }
 0x264   : > { %v1643_v56 = vpop.f32.mrf.mxu1  ;;  %v2277_v60 = vld [vmem:[#allocation3 + $0x20] ss:$2 sm:$0xff] }
 0x265   : > { %v1644_v59 = vadd.f32 %v1643_v56, %v3797_v8  ;;  %v2290_v2 = vpack.c.bf16 %v2277_v60, %v2275_v53 }
 0x267   : > { %2370 = vmatmul.bf16.vlgmr.msrb.gmra.mxu2 %v2290_v2 }
 0x26a   : > { %v1672_v63 = vpop.f32.mrf.mxu2 }
 0x26b   : > { %v1673_v3 = vadd.f32 %v1672_v63, %v1644_v59  ;;  %v1701_v4 = vpop.f32.mrf.mxu3 }
 0x26c   : > { %v1645_v5 = vpop.f32.mrf.mxu1 }
 0x26d   : > { %v3840_v6 = vadd.f32 %v1701_v4, %v1673_v3  ;;  %v1646_v8 = vadd.f32 %v1645_v5, %v1473_v11  ;;  %v431_v3 = vld [vmem:[%s3719_s25 + $0x30] sm:$0xff]   ;;  %v818_v4 = vunpack.c.l.bf16 %v427_v38  ;;  %v819_v5 = vunpack.c.h.bf16 %v427_v38 }
 0x26e   : > { %v822_v7 = vunpack.c.l.bf16 %v431_v3  ;;  %v823_v10 = vunpack.c.h.bf16 %v431_v3 }
 0x26f   : > { %850 = vst [vmem:[#allocation3 + $0x40] sm:$0xff] %v818_v4 }
 0x270   : > { %851 = vst [vmem:[#allocation3 + $0x48] sm:$0xff] %v819_v5 }
 0x271   : > { %854 = vst [vmem:[#allocation3 + $0x60] sm:$0xff] %v822_v7 }
 0x272   : > { %v1674_v12 = vpop.f32.mrf.mxu2  ;;  %855 = vst [vmem:[#allocation3 + $0x68] sm:$0xff] %v823_v10 }
 0x273   : > { %v1675_v13 = vadd.f32 %v1674_v12, %v1646_v8  ;;  %v1703_v14 = vpop.f32.mrf.mxu3  ;;  %v1459_v8 = vadd.f32 %v3833_v54, %v3829_v50 }
 0x274   : > { %v1648_v15 = vpop.f32.mrf.mxu1 }
 0x275   : > { %v3843_v17 = vadd.f32 %v1703_v14, %v1675_v13  ;;  %v1649_v0 = vadd.f32 %v1648_v15, %v3813_v33  ;;  %v3165_v15 = vld [vmem:[#allocation10] sm:$0xff] }
 0x276   : > { %2253 = vmatpush.bf16.msrb.mxu1 %v3165_v15 }
 0x279   : > { %v2281_v54 = vld [vmem:[#allocation3 + $0x60] ss:$2 sm:$0xff] }
 0x27a   : > { %v1677_v19 = vpop.f32.mrf.mxu2 }
 0x27b   : > { %v1678_v9 = vadd.f32 %v1677_v19, %v1649_v0  ;;  %v1706_v22 = vpop.f32.mrf.mxu3  ;;  %v1488_v0 = vadd.f32 %v3835_v55, %v1459_v8  ;;  %v2279_v19 = vld [vmem:[#allocation3 + $0x40] ss:$2 sm:$0xff] }
 0x27c   : > { %v1650_v23 = vpop.f32.mrf.mxu1 }
 0x27d   : > { %v3848_v25 = vadd.f32 %v1706_v22, %v1678_v9  ;;  %v1651_v33 = vadd.f32 %v1650_v23, %v1478_v27  ;;  %v2291_v23 = vpack.c.bf16 %v2281_v54, %v2279_v19  ;;  %v826_v27 = vunpack.c.l.bf16 %v435_v20 }
 0x27f   : > { %2375 = vmatmul.bf16.gmra.mxu2 %v2291_v23  ;;  %858 = vst [vmem:[#allocation3 + $0x80] sm:$0xff] %v826_v27 }
 0x282   : > { %v1679_v28 = vpop.f32.mrf.mxu2 }
 0x283   : > { %v1680_v29 = vadd.f32 %v1679_v28, %v1651_v33  ;;  %v1708_v30 = vpop.f32.mrf.mxu3  ;;  %v827_v33 = vunpack.c.h.bf16 %v435_v20  ;;  %v830_v28 = vunpack.c.l.bf16 %v439_v26 }
 0x284   : > { %v1653_v31 = vpop.f32.mrf.mxu1 }
 0x285   : > { %v3851_v32 = vadd.f32 %v1708_v30, %v1680_v29  ;;  %v1654_v57 = vadd.f32 %v1653_v31, %v3821_v16  ;;  %v831_v29 = vunpack.c.h.bf16 %v439_v26  ;;  %859 = vst [vmem:[#allocation3 + $0x88] sm:$0xff] %v827_v33 }
 0x286   : > { %862 = vst [vmem:[#allocation3 + $0xa0] sm:$0xff] %v830_v28 }
 0x287   : > { %863 = vst [vmem:[#allocation3 + $0xa8] sm:$0xff] %v831_v29 }
 0x28a   : > { %v1682_v42 = vpop.f32.mrf.mxu2 }
 0x28b   : > { %v1683_v44 = vadd.f32 %v1682_v42, %v1654_v57  ;;  %v1711_v45 = vpop.f32.mrf.mxu3 }
 0x28c   : > { %v1655_v46 = vpop.f32.mrf.mxu1  ;;  %v2283_v35 = vld [vmem:[#allocation3 + $0x80] ss:$2 sm:$0xff] }
 0x28d   : > { %v3858_v16 = vadd.f32 %v1711_v45, %v1683_v44  ;;  %v1656_v49 = vadd.f32 %v1655_v46, %v1483_v47  ;;  %v443_v47 = vld [vmem:[%s3719_s25 + $0x60] sm:$0xff]   ;;  %s2435_s25 = scalar_lea.hbm %s3954_s9, %s3181_s26 }
 0x28e   : > { %v2285_v42 = vld [vmem:[#allocation3 + $0xa0] ss:$2 sm:$0xff]  ;;  %s2438_s15 = sshll.u32 %s2435_s25, 4  ;;  %s2439_s15 = int_to_ptr.hbm [resolvable:$true] %s2438_s15 }
 0x28f   : > { %v2292_v44 = vpack.c.bf16 %v2285_v42, %v2283_v35  ;;  %s3465_s13 = sshra.s32 %s2439_s15, 4  ;;  %s3466_s13 = int_to_ptr.hbm [resolvable:$true] %s3465_s13 }
 0x290   : > { %s3467_s28 = scalar_lea.hbm %s3466_s13, 32  ;;  %p3472_p11 = scmp.lt.s32.totalorder %s3466_s13, %s3954_s9 }
 0x291   : > { %2380 = vmatmul.bf16.gmra.mxu2 %v2292_v44  ;;  %p3468_p1 = scmp.ne.s32.totalorder %s3466_s13, %s3467_s28  ;;  %p3473_p2 = scmp.lt.s32.totalorder %s3471_s27, %s3467_s28 }
 0x292   : > { %v1684_v52 = vpop.f32.mrf.mxu2 }
 0x293   : > { %v1685_v56 = vadd.f32 %v1684_v52, %v1656_v49  ;;  %v1713_v59 = vpop.f32.mrf.mxu3  ;;  %v834_v49 = vunpack.c.l.bf16 %v443_v47  ;;  %v838_v52 = vunpack.c.l.bf16 %v447_v48  ;;  %p3469_p4 = pnand %p3468_p1, %p3682_p3  ;;  %p3474_p9 = por %p3473_p2, %p3472_p11 }
 0x294   : > { %v1658_v36 = vpop.f32.mrf.mxu1 }
 0x295   : > { %v3861_v61 = vadd.f32 %v1713_v59, %v1685_v56  ;;  %v1659_v63 = vadd.f32 %v1658_v36, %v3831_v51  ;;  %v839_v56 = vunpack.c.h.bf16 %v447_v48  ;;  %866 = vst [vmem:[#allocation3 + $0xc0] sm:$0xff] %v834_v49  ;;  %p3470_p8 = pneg %p3469_p4 }
 0x296   : > { %870 = vst [vmem:[#allocation3 + $0xe0] sm:$0xff] %v838_v52 }
 0x297   : > { %871 = vst [vmem:[#allocation3 + $0xe8] sm:$0xff] %v839_v56  ;;  %p3475_p10 = pnand %p3474_p9, %p3470_p8 }
 0x29a   : > { %v1687_v11 = vpop.f32.mrf.mxu2 }
 0x29b   : > { %v1688_v12 = vadd.f32 %v1687_v11, %v1659_v63  ;;  %v1716_v13 = vpop.f32.mrf.mxu3 }
 0x29c   : > { %v1660_v14 = vpop.f32.mrf.mxu1 }
 0x29d   : > { %v3868_v51 = vadd.f32 %v1716_v13, %v1688_v12  ;;  %v1661_v1 = vadd.f32 %v1660_v14, %v1488_v0 }
 0x29e   : > { %v2289_v8 = vld [vmem:[#allocation3 + $0xe0] ss:$2 sm:$0xff] }
 0x2a2   : > { %v1689_v18 = vpop.f32.mrf.mxu2 }
 0x2a3   : > { %v1690_v21 = vadd.f32 %v1689_v18, %v1661_v1  ;;  %v1718_v9 = vpop.f32.mrf.mxu3 }
 0x2a4   : > { %v2068_v50 = vpop.f32.mrf.mxu1 }
 0x2a5   : > { %v3871_v22 = vadd.f32 %v1718_v9, %v1690_v21 }
 0x2aa   : > { %v2097_v30 = vpop.f32.mrf.mxu2 }
 0x2ab   : > { %v2098_v55 = vadd.f32 %v2097_v30, %v2068_v50  ;;  %v2126_v31 = vpop.f32.mrf.mxu3 }
 0x2ac   : > { %v2070_v57 = vpop.f32.mrf.mxu1 }
 0x2ad   : > { %v2127_v58 = vadd.f32 %v2126_v31, %v2098_v55 }
 0x2af   : > { %v2146_v37 = vadd.f32 %v2127_v58, %v3840_v6  ;;  %v835_v6 = vunpack.c.h.bf16 %v443_v47 }
 0x2b1   : > { %v2158_v45 = vadd.f32 %v3879_v39, %v2146_v37  ;;  %867 = vst [vmem:[#allocation3 + $0xc8] sm:$0xff] %v835_v6 }
 0x2b2   : > { %v2099_v34 = vpop.f32.mrf.mxu2 }
 0x2b3   : > { %v2100_v40 = vadd.f32 %v2099_v34, %v2070_v57  ;;  %v2128_v62 = vpop.f32.mrf.mxu3  ;;  %v2166_v24 = vmax.f32 %v2158_v45, 0.0 }
 0x2b4   : > { %v2073_v41 = vpop.f32.mrf.mxu1 }
 0x2b5   : > { %v2129_v43 = vadd.f32 %v2128_v62, %v2100_v40 }
 0x2b7   : > { %v2147_v46 = vadd.f32 %v2129_v43, %v3843_v17 }
 0x2b8   : > { %v2287_v4 = vld [vmem:[#allocation3 + $0xc0] ss:$2 sm:$0xff] }
 0x2b9   : > { %v2159_v53 = vadd.f32 %v3879_v39, %v2147_v46  ;;  %v2293_v13 = vpack.c.bf16 %v2289_v8, %v2287_v4 }
 0x2ba   : > { %v2102_v59 = vpop.f32.mrf.mxu2 }
 0x2bb   : > { %v2167_v36 = vmax.f32 %v2159_v53, 0.0  ;;  %v2103_v60 = vadd.f32 %v2102_v59, %v2073_v41  ;;  %v2131_v63 = vpop.f32.mrf.mxu3  ;;  %2385 = vmatmul.bf16.gmra.mxu2 %v2293_v13  ;;  %v3300_v53 = vld [vmem:[%s3952_s7] ss:$0 sm:$0xff] }
 0x2bc   : > { %v2075_v2 = vpop.f32.mrf.mxu1 }
 0x2bd   : > { %v2174_v38 = vpack.c.bf16 %v2167_v36, %v2166_v24  ;;  %v2132_v17 = vadd.f32 %v2131_v63, %v2103_v60 }
 0x2bf   : > { %2254 = vmatmul.bf16.vlgmr.msrb.gmra.mxu1 %v2174_v38  ;;  %v2148_v5 = vadd.f32 %v2132_v17, %v3848_v25 }
 0x2c1   : > { %v2160_v14 = vadd.f32 %v3879_v39, %v2148_v5 }
 0x2c2   : > { %v2104_v3 = vpop.f32.mrf.mxu2 }
 0x2c3   : > { %v2105_v7 = vadd.f32 %v2104_v3, %v2075_v2  ;;  %v2133_v10 = vpop.f32.mrf.mxu3  ;;  %v2168_v18 = vmax.f32 %v2160_v14, 0.0 }
 0x2c4   : > { %v2078_v11 = vpop.f32.mrf.mxu1 }
 0x2c5   : > { %v2134_v12 = vadd.f32 %v2133_v10, %v2105_v7 }
 0x2c7   : > { %v2149_v15 = vadd.f32 %v2134_v12, %v3851_v32 }
 0x2c9   : > { %v2161_v0 = vadd.f32 %v3879_v39, %v2149_v15 }
 0x2ca   : > { %v2107_v1 = vpop.f32.mrf.mxu2 }
 0x2cb   : > { %v2169_v19 = vmax.f32 %v2161_v0, 0.0  ;;  %v2108_v21 = vadd.f32 %v2107_v1, %v2078_v11  ;;  %v2136_v9 = vpop.f32.mrf.mxu3 }
 0x2cc   : > { %v2080_v25 = vpop.f32.mrf.mxu1 }
 0x2cd   : > { %v2175_v50 = vpack.c.bf16 %v2169_v19, %v2168_v18  ;;  %v2137_v54 = vadd.f32 %v2136_v9, %v2108_v21 }
 0x2cf   : > { %2259 = vmatmul.bf16.gmra.mxu1 %v2175_v50  ;;  %v2150_v20 = vadd.f32 %v2137_v54, %v3858_v16 }
 0x2d1   : > { %v2162_v32 = vadd.f32 %v3879_v39, %v2150_v20 }
 0x2d2   : > { %v2109_v23 = vpop.f32.mrf.mxu2 }
 0x2d3   : > { %v2110_v26 = vadd.f32 %v2109_v23, %v2080_v25  ;;  %v2138_v27 = vpop.f32.mrf.mxu3  ;;  %v2170_v31 = vmax.f32 %v2162_v32, 0.0 }
 0x2d4   : > { %v2083_v29 = vpop.f32.mrf.mxu1 }
 0x2d5   : > { %v2139_v33 = vadd.f32 %v2138_v27, %v2110_v26 }
 0x2d7   : > { %v2151_v28 = vadd.f32 %v2139_v33, %v3861_v61 }
 0x2d9   : > { %v2163_v30 = vadd.f32 %v3879_v39, %v2151_v28 }
 0x2da   : > { %v2112_v55 = vpop.f32.mrf.mxu2 }
 0x2db   : > { %v2171_v57 = vmax.f32 %v2163_v30, 0.0  ;;  %v2113_v58 = vadd.f32 %v2112_v55, %v2083_v29  ;;  %v2141_v34 = vpop.f32.mrf.mxu3 }
 0x2dc   : > { %v2085_v40 = vpop.f32.mrf.mxu1 }
 0x2dd   : > { %v2176_v35 = vpack.c.bf16 %v2171_v57, %v2170_v31  ;;  %v2142_v37 = vadd.f32 %v2141_v34, %v2113_v58 }
 0x2df   : > { %2264 = vmatmul.bf16.gmra.mxu1 %v2176_v35  ;;  %v2152_v62 = vadd.f32 %v2142_v37, %v3868_v51  ;;  %v3299_v51 = vld [vmem:[%s3953_s8] ss:$0 sm:$0xff] }
 0x2e1   : > { %v2164_v61 = vadd.f32 %v3879_v39, %v2152_v62 }
 0x2e2   : > { %v2114_v16 = vpop.f32.mrf.mxu2 }
 0x2e3   : > { %v2115_v41 = vadd.f32 %v2114_v16, %v2085_v40  ;;  %v2143_v42 = vpop.f32.mrf.mxu3  ;;  %v2172_v46 = vmax.f32 %v2164_v61, 0.0 }
 0x2e5   : > { %v2144_v43 = vadd.f32 %v2143_v42, %v2115_v41 }
 0x2e7   : > { %v2153_v44 = vadd.f32 %v2144_v43, %v3871_v22 }
 0x2e9   : > { %v2165_v45 = vadd.f32 %v3879_v39, %v2153_v44 }
 0x2ea   : > { %v2371_v49 = vpop.f32.mrf.mxu2 }
 0x2eb   : > { %v2173_v47 = vmax.f32 %v2165_v45, 0.0  ;;  %v2372_v22 = vadd.f32 %v3299_v51, %v2371_v49 }
 0x2ed   : > { %v2177_v48 = vpack.c.bf16 %v2173_v47, %v2172_v46 }
 0x2ef   : > { %2269 = vmatmul.bf16.gmra.mxu1 %v2177_v48 }
 0x2f2   : > { %v2373_v6 = vpop.f32.mrf.mxu2 }
 0x2f3   : > { %v2374_v36 = vadd.f32 %v3299_v51, %v2373_v6 }
 0x302   : > { %v2376_v56 = vpop.f32.mrf.mxu2 }
 0x303   : > { %v2377_v5 = vadd.f32 %v3299_v51, %v2376_v56 }
 0x30a   : > { %v2378_v17 = vpop.f32.mrf.mxu2 }
 0x30b   : > { %v2379_v12 = vadd.f32 %v3299_v51, %v2378_v17 }
 0x314   : > { %v2381_v11 = vpop.f32.mrf.mxu2 }
 0x315   : > { %v2382_v21 = vadd.f32 %v3299_v51, %v2381_v11 }
 0x31c   : > { %v2383_v19 = vpop.f32.mrf.mxu2 }
 0x31d   : > { %v2384_v54 = vadd.f32 %v3299_v51, %v2383_v19 }
 0x33c   : > { %v2255_v52 = vpop.f32.mrf.mxu1 }
 0x33d   : > { %v2256_v59 = vadd.f32 %v3300_v53, %v2255_v52 }
 0x33e   : > { %v2386_v26 = vpop.f32.mrf.mxu2 }
 0x33f   : > { %v2391_v24 = vadd.f32 %v2372_v22, %v2256_v59  ;;  %v2387_v29 = vadd.f32 %v3299_v51, %v2386_v26 }
 0x341   : > { %v2399_v2 = vmax.f32 %v2391_v24, 0.0 }
 0x344   : > { %v2257_v39 = vpop.f32.mrf.mxu1 }
 0x345   : > { %v2258_v60 = vadd.f32 %v3300_v53, %v2257_v39 }
 0x346   : > { %v2388_v55 = vpop.f32.mrf.mxu2 }
 0x347   : > { %v2392_v63 = vadd.f32 %v2374_v36, %v2258_v60  ;;  %v2389_v58 = vadd.f32 %v3299_v51, %v2388_v55 }
 0x349   : > { %v2400_v38 = vmax.f32 %v2392_v63, 0.0 }
 0x34b   : > { %v3185_v3 = vpack.c.bf16 %v2400_v38, %v2399_v2 }
 0x34c   : > { %v2260_v4 = vpop.f32.mrf.mxu1 }
 0x34d   : > { %3186 = vst [vmem:[%s3905_s23] sm:$0xff] %v3185_v3   ;;  %v2261_v7 = vadd.f32 %v3300_v53, %v2260_v4 }
 0x34f   : > { %v2393_v8 = vadd.f32 %v2377_v5, %v2261_v7 }
 0x351   : > { %v2401_v15 = vmax.f32 %v2393_v8, 0.0 }
 0x354   : > { %v2262_v10 = vpop.f32.mrf.mxu1 }
 0x355   : > { %v2263_v13 = vadd.f32 %v3300_v53, %v2262_v10 }
 0x357   : > { %v2394_v14 = vadd.f32 %v2379_v12, %v2263_v13 }
 0x359   : > { %v2402_v0 = vmax.f32 %v2394_v14, 0.0 }
 0x35b   : > { %v3190_v1 = vpack.c.bf16 %v2402_v0, %v2401_v15 }
 0x35c   : > { %v2265_v18 = vpop.f32.mrf.mxu1 }
 0x35d   : > { %3202 = vst [vmem:[%s3905_s23 + $0x8] sm:$0xff] %v3190_v1   ;;  %v2266_v9 = vadd.f32 %v3300_v53, %v2265_v18 }
 0x35f   : > { %v2395_v25 = vadd.f32 %v2382_v21, %v2266_v9 }
 0x361   : > { %v2403_v27 = vmax.f32 %v2395_v25, 0.0 }
 0x364   : > { %v2267_v50 = vpop.f32.mrf.mxu1 }
 0x365   : > { %v2268_v23 = vadd.f32 %v3300_v53, %v2267_v50 }
 0x367   : > { %v2396_v20 = vadd.f32 %v2384_v54, %v2268_v23 }
 0x369   : > { %v2404_v33 = vmax.f32 %v2396_v20, 0.0 }
 0x36b   : > { %v3195_v32 = vpack.c.bf16 %v2404_v33, %v2403_v27 }
 0x36c   : > { %v2270_v28 = vpop.f32.mrf.mxu1 }
 0x36d   : > { %3203 = vst [vmem:[%s3905_s23 + $0x10] sm:$0xff] %v3195_v32   ;;  %v2271_v30 = vadd.f32 %v3300_v53, %v2270_v28 }
 0x36f   : > { %v2397_v57 = vadd.f32 %v2387_v29, %v2271_v30 }
 0x371   : > { %v2405_v37 = vmax.f32 %v2397_v57, 0.0 }
 0x374   : > { %v2272_v31 = vpop.f32.mrf.mxu1 }
 0x375   : > { %v2273_v34 = vadd.f32 %v3300_v53, %v2272_v31 }
 0x377   : > { %v2398_v35 = vadd.f32 %v2389_v58, %v2273_v34 }
 0x379   : > { %v2406_v40 = vmax.f32 %v2398_v35, 0.0 }
 0x37b   : > { %v3200_v16 = vpack.c.bf16 %v2406_v40, %v2405_v37 }
 0x37d   : > { %3204 = vst [vmem:[%s3905_s23 + $0x18] sm:$0xff] %v3200_v16  }
 0x37e   : > { %3478 = shalt.err (!%p3475_p10)
}
 0x37f   : > { %s3534_s24 = smov 64   ;;  %s3535_s23 = smov 4  }
 0x380   : > { %3223 = dma.vmem_to_hbm [thread:$0]  (%p3682_p3), %s2437_s1, 512, %s2439_s15, %s2424_s20, %s3534_s24, %s3534_s24, %s3535_s23  }
 0x381 PF: > { %s2453_s26 = sand.u32 1, %s3513_s30   ;;  %p3971_p12 = scmp.ge.s32.totalorder %s3525_s12, 2 }
 0x382   : > { %s2454_s2 = scalar_lea.sflag [#allocation6], %s2453_s26 }
 0x383   : > { %p3243_p13 = pnand %p3971_p12, %p3621_p6 }
 0x385   : > { %p3244_p0 = pneg %p3243_p13 }
 0x387   : > { %3508 = dma.done.wait (%p3244_p0), %s2454_s2, 512  }
 0x388   : > { %3510 = vsyncadd (%p3244_p0), %s2454_s2, 4294966784  ;;  %p24_p5 = scmp.ge.s32.totalorder %s3672_s14, 4   ;;  %s3972_s30 = smov %s3517_s10 }
 0x389   : > { %s3973_s10 = smov %s3521_s11  ;;  %s3974_s11 = smov %s3688_s22 }
 0x38a   : > { %s3975_s12 = smov %s3672_s14  ;;  %26 = sbr.rel (!%p24_p5) target bundleno = 11 (0xb), region = 201 }
 0x38f   :  { %2460 = vsyncpa [#allocation5], 1 }
 0x390   :  { %2462 = vsyncpa [#allocation5 + $0x1], 1 }
 0x391   :  { %2463 = vsyncpa [#allocation8], 1 }
 0x392   :  { %2464 = vsyncpa [#allocation11], 1 }
 0x393   :  { %2465 = vsyncpa [#allocation6], 1 }
 0x394   :  { %2467 = vsyncpa [#allocation6 + $0x1], 1 }

</bundles_post_ra>
